<compile_context>
chip_gen: v7x
topology: tpu7x:2x2x1
jax: 0.10.0
libtpu: 0.0.40
codegen_flags: <defaults>
</compile_context>

<pallas_src>
import jax
import jax.numpy as jnp
import numpy as np
from jax.experimental import pallas as pl
from jax.experimental.pallas import tpu as pltpu


# ----------------------------- Pallas kernel -------------------------------- #

def gru_fused_kernel(x_ref, wih_ref, whh_ref, bcomb_ref, bhhn_ref, lidx_ref,
                     img_ref, wlh_ref, wlf_ref, blin_ref, out_ref):
    """Fused GRU recurrence + last-step select + linear head + softmax.

    x_ref    : (T*B, E)   time-major embedded inputs, batch-minor, B padded to 8
    wih_ref  : (E, 3H)    input->gates weights (gate order r, z, n)
    whh_ref  : (H, 3H)    hidden->gates weights, fused slab (one matmul / step)
    bcomb_ref: (1, 3H)    b_ih with b_hh folded in for the r and z gates
    bhhn_ref : (1, H)     hidden bias of the n gate (must be scaled by r)
    lidx_ref : (B, 1) i32 last_words - 1 (time index of last valid step; -1 = pad row)
    img_ref  : (B, O, F)  image features (batch-padded)
    wlh_ref  : (1, H)     linear weights for the hidden part
    wlf_ref  : (1, F)     linear weights for the image-feature part
    blin_ref : (1, 1)     linear bias (SMEM scalar)
    out_ref  : (B, O)     softmax(score)
    """
    TB, E = x_ref.shape
    H = whh_ref.shape[0]
    B = lidx_ref.shape[0]
    T = TB // B

    # ---- hoisted input projection: ONE matmul for all T steps --------------
    # bcomb already contains b_ih (all gates) + b_hh (r, z gates only).
    gi = jnp.dot(x_ref[...], wih_ref[...], preferred_element_type=jnp.float32)
    gi = gi + bcomb_ref[...]                                  # (T*B, 3H)

    whh = whh_ref[...]                                        # (H, 3H) fused slab
    bhh_n = jnp.broadcast_to(bhhn_ref[...], (B, H))           # broadcast hoisted
    last_idx = lidx_ref[...]                                  # (B, 1) int32

    # ---- recurrence: fully unrolled, h / last carried in registers ---------
    h = jnp.zeros((B, H), jnp.float32)                        # init_hidden() zeros
    last = jnp.zeros((B, H), jnp.float32)
    for t in range(T):                                        # T static (=8), unrolled
        gi_t = gi[t * B:(t + 1) * B, :]                       # aligned sublane slab
        gh = jnp.dot(h, whh, preferred_element_type=jnp.float32)  # ONE MXU push/step
        a = gi_t + gh
        rz = jax.nn.sigmoid(a[:, 0:2 * H])                    # one EUP push for r & z
        r = rz[:, 0:H]
        z = rz[:, H:2 * H]
        n = jnp.tanh(gi_t[:, 2 * H:3 * H] + r * (gh[:, 2 * H:3 * H] + bhh_n))
        h = (1.0 - z) * n + z * h
        last = jnp.where(last_idx == t, h, last)              # in-kernel "gather"

    # ---- fused score head: VPU multiply + reduce, then softmax over O ------
    s_h = jnp.sum(last * wlh_ref[...], axis=-1, keepdims=True)          # (B, 1)
    s_f = jnp.sum(img_ref[...] * wlf_ref[...][None, :, :], axis=-1)     # (B, O)
    s = s_f + s_h + blin_ref[0, 0]
    m = jnp.max(s, axis=-1, keepdims=True)
    e = jnp.exp(s - m)
    out_ref[...] = (e / jnp.sum(e, axis=-1, keepdims=True)).astype(out_ref.dtype)


# ------------------------------ Wrapper -------------------------------------- #

def gru_model_forward(params, text_input, image_input, last_words):
    """Mirror of GRU.forward (fresh zero hidden state, as in init_hidden)."""
    B, T = text_input.shape
    O, F = image_input.shape[1], image_input.shape[2]
    H = params['w_hh_t'].shape[0]

    B_pad = 8   # one full sublane group: every per-t slab is sublane-aligned

    # Embedding gather produces the (T*B_pad, E) time-major layout directly
    # (transpose happens on the tiny int id array, not on the embeddings).
    ids_tm = jnp.transpose(text_input).astype(jnp.int32)             # (T, B)
    ids_tm = jnp.pad(ids_tm, ((0, 0), (0, B_pad - B)))               # pad batch (token 0)
    x2 = params['emb'][ids_tm.reshape(-1)]                           # (T*B_pad, E)

    # Fold b_hh for r/z gates into the input bias; n-gate hidden bias stays separate.
    b_comb = jnp.concatenate(
        [params['b_ih'][:, :2 * H] + params['b_hh'][:, :2 * H],
         params['b_ih'][:, 2 * H:]], axis=1)                         # (1, 3H)
    bhh_n = params['b_hh'][:, 2 * H:]                                # (1, H)

    last_idx = (last_words.astype(jnp.int32) - 1).reshape(B, 1)
    last_idx = jnp.pad(last_idx, ((0, B_pad - B), (0, 0)), constant_values=-1)
    img_pad = jnp.pad(image_input, ((0, B_pad - B), (0, 0), (0, 0)))

    vmem = pl.BlockSpec(memory_space=pltpu.MemorySpace.VMEM)
    smem = pl.BlockSpec(memory_space=pltpu.MemorySpace.SMEM)

    out = pl.pallas_call(
        gru_fused_kernel,
        out_shape=jax.ShapeDtypeStruct((B_pad, O), jnp.float32),
        in_specs=[vmem, vmem, vmem, vmem, vmem, vmem, vmem, vmem, vmem, smem],
        out_specs=vmem,
    )(x2, params['w_ih_t'], params['w_hh_t'], b_comb, bhh_n,
      last_idx, img_pad, params['w_lin_h'], params['w_lin_f'], params['b_lin'])
    return out[:B]


# ----------------------------- Pure-JAX reference ---------------------------- #

def reference_forward(params, text_input, image_input, last_words):
    B, T = text_input.shape
    H = params['w_hh_t'].shape[0]
    embeds = params['emb'][text_input]                     # (B, T, E)
    h = jnp.zeros((B, H), jnp.float32)
    outs = []
    for t in range(T):
        x_t = embeds[:, t, :]
        gi = x_t @ params['w_ih_t'] + params['b_ih']
        gh = h @ params['w_hh_t'] + params['b_hh']
        r = jax.nn.sigmoid(gi[:, 0:H] + gh[:, 0:H])
        z = jax.nn.sigmoid(gi[:, H:2 * H] + gh[:, H:2 * H])
        n = jnp.tanh(gi[:, 2 * H:] + r * gh[:, 2 * H:])
        h = (1.0 - z) * n + z * h
        outs.append(h)
    gru_out = jnp.stack(outs, axis=1)                      # (B, T, H)
    last = gru_out[jnp.arange(B), last_words - 1]          # (B, H)
    s = (jnp.einsum('bof,f->bo', image_input, params['w_lin_f'][0]) +
         last @ params['w_lin_h'].T +
         params['b_lin'][0, 0])
    return jax.nn.softmax(s, axis=-1)


# --------------------------------- Main --------------------------------------- #

if __name__ == "__main__":
    # Module hyper-parameters (small, consistent with the forward pass).
    vocab_size = 50
    embedding_dim = 16
    img_feature_size = 32
    output_dim = 8
    hidden_size = 32
    batch_size = 2
    seq_len = 8

    # Deterministic parameter init.
    pkey = jax.random.PRNGKey(42)
    k = jax.random.split(pkey, 8)
    s = 1.0 / np.sqrt(hidden_size)
    params = {
        'emb':     jax.random.normal(k[0], (vocab_size, embedding_dim), jnp.float32),
        'w_ih_t':  jax.random.uniform(k[1], (embedding_dim, 3 * hidden_size),
                                      jnp.float32, -s, s),
        'w_hh_t':  jax.random.uniform(k[2], (hidden_size, 3 * hidden_size),
                                      jnp.float32, -s, s),
        'b_ih':    jax.random.uniform(k[3], (1, 3 * hidden_size), jnp.float32, -s, s),
        'b_hh':    jax.random.uniform(k[4], (1, 3 * hidden_size), jnp.float32, -s, s),
        'w_lin_h': jax.random.uniform(k[5], (1, hidden_size), jnp.float32, -s, s),
        'w_lin_f': jax.random.uniform(k[6], (1, img_feature_size), jnp.float32, -s, s),
        'b_lin':   jax.random.uniform(k[7], (1, 1), jnp.float32, -s, s),
    }

    # Deterministic example inputs.
    ikey = jax.random.PRNGKey(0)
    ik = jax.random.split(ikey, 3)
    text_input = jax.random.randint(ik[0], (batch_size, seq_len), 0, vocab_size,
                                    dtype=jnp.int32)
    image_input = jax.random.normal(ik[1], (batch_size, output_dim, img_feature_size),
                                    jnp.float32)
    # indices in [1, seq_len] so that (last_words - 1) is a valid time index
    last_words = jax.random.randint(ik[2], (batch_size,), 1, seq_len + 1,
                                    dtype=jnp.int32)

    score = gru_model_forward(params, text_input, image_input, last_words)
    score = jax.block_until_ready(score)

    ref = reference_forward(params, text_input, image_input, last_words)
    np.testing.assert_allclose(np.asarray(score), np.asarray(ref),
                               rtol=1e-5, atol=1e-5)
    assert score.shape == (batch_size, output_dim)

    # TODO(synk): the PyTorch module keeps self.hidden across calls; here each
    # forward uses a fresh zero hidden state (matching init_hidden()).
    print("KERNEL_OK")
</pallas_src>

<mosaic_0001>
module attributes {stable_mosaic.version = 11 : i64} {
  func.func @gru_fused_kernel(%arg0: memref<64x16xf32, #tpu.memory_space<vmem>>, %arg1: memref<16x96xf32, #tpu.memory_space<vmem>>, %arg2: memref<32x96xf32, #tpu.memory_space<vmem>>, %arg3: memref<1x96xf32, #tpu.memory_space<vmem>>, %arg4: memref<1x32xf32, #tpu.memory_space<vmem>>, %arg5: memref<8x1xi32, #tpu.memory_space<vmem>>, %arg6: memref<8x8x32xf32, #tpu.memory_space<vmem>>, %arg7: memref<1x32xf32, #tpu.memory_space<vmem>>, %arg8: memref<1x32xf32, #tpu.memory_space<vmem>>, %arg9: memref<1x1xf32, #tpu.memory_space<smem>>, %arg10: memref<8x8xf32, #tpu.memory_space<vmem>>) attributes {dimension_semantics = [], scalar_prefetch = 0 : i64, scratch_operands = 0 : i64, tpu.core_type = #tpu.core_type<tc>} {
    %c0 = arith.constant 0 : index
    %c0_0 = arith.constant 0 : index
    %0 = vector.load %arg0[%c0, %c0_0] : memref<64x16xf32, #tpu.memory_space<vmem>>, vector<64x16xf32>
    %c0_1 = arith.constant 0 : index
    %c0_2 = arith.constant 0 : index
    %1 = vector.load %arg1[%c0_1, %c0_2] : memref<16x96xf32, #tpu.memory_space<vmem>>, vector<16x96xf32>
    %cst = arith.constant dense<0.000000e+00> : vector<64x96xf32>
    %2 = tpu.matmul %0, %1, %cst {dimension_numbers = #tpu.dot_dimension_numbers<[1], [0], [0], [1], [0, 0, 1, 1], [], []>} : vector<64x16xf32>, vector<16x96xf32>, vector<64x96xf32> -> vector<64x96xf32>
    %c0_3 = arith.constant 0 : index
    %c0_4 = arith.constant 0 : index
    %3 = vector.load %arg3[%c0_3, %c0_4] : memref<1x96xf32, #tpu.memory_space<vmem>>, vector<1x96xf32>
    %4 = vector.broadcast %3 : vector<1x96xf32> to vector<64x96xf32>
    %5 = arith.addf %2, %4 : vector<64x96xf32>
    %c0_5 = arith.constant 0 : index
    %c0_6 = arith.constant 0 : index
    %6 = vector.load %arg2[%c0_5, %c0_6] : memref<32x96xf32, #tpu.memory_space<vmem>>, vector<32x96xf32>
    %c0_7 = arith.constant 0 : index
    %c0_8 = arith.constant 0 : index
    %7 = vector.load %arg4[%c0_7, %c0_8] : memref<1x32xf32, #tpu.memory_space<vmem>>, vector<1x32xf32>
    %8 = vector.shape_cast %7 : vector<1x32xf32> to vector<1x32xf32>
    %9 = vector.broadcast %8 : vector<1x32xf32> to vector<8x32xf32>
    %c0_9 = arith.constant 0 : index
    %c0_10 = arith.constant 0 : index
    %10 = vector.load %arg5[%c0_9, %c0_10] : memref<8x1xi32, #tpu.memory_space<vmem>>, vector<8x1xi32>
    %cst_11 = arith.constant 0.000000e+00 : f32
    %11 = vector.broadcast %cst_11 : f32 to vector<8x32xf32>
    %cst_12 = arith.constant 0.000000e+00 : f32
    %12 = vector.broadcast %cst_12 : f32 to vector<8x32xf32>
    %13 = vector.extract_strided_slice %5 {offsets = [0, 0], sizes = [8, 96], strides = [1, 1]} : vector<64x96xf32> to vector<8x96xf32>
    %cst_13 = arith.constant dense<0.000000e+00> : vector<8x96xf32>
    %14 = tpu.matmul %11, %6, %cst_13 {dimension_numbers = #tpu.dot_dimension_numbers<[1], [0], [0], [1], [0, 0, 1, 1], [], []>} : vector<8x32xf32>, vector<32x96xf32>, vector<8x96xf32> -> vector<8x96xf32>
    %15 = arith.addf %13, %14 : vector<8x96xf32>
    %16 = vector.extract_strided_slice %15 {offsets = [0, 0], sizes = [8, 64], strides = [1, 1]} : vector<8x96xf32> to vector<8x64xf32>
    %17 = arith.negf %16 : vector<8x64xf32>
    %18 = math.exp %17 : vector<8x64xf32>
    %cst_14 = arith.constant 1.000000e+00 : f32
    %19 = vector.broadcast %cst_14 : f32 to vector<8x64xf32>
    %20 = arith.addf %19, %18 : vector<8x64xf32>
    %21 = arith.divf %19, %20 : vector<8x64xf32>
    %22 = vector.extract_strided_slice %21 {offsets = [0, 0], sizes = [8, 32], strides = [1, 1]} : vector<8x64xf32> to vector<8x32xf32>
    %23 = vector.extract_strided_slice %21 {offsets = [0, 32], sizes = [8, 32], strides = [1, 1]} : vector<8x64xf32> to vector<8x32xf32>
    %24 = vector.extract_strided_slice %13 {offsets = [0, 64], sizes = [8, 32], strides = [1, 1]} : vector<8x96xf32> to vector<8x32xf32>
    %25 = vector.extract_strided_slice %14 {offsets = [0, 64], sizes = [8, 32], strides = [1, 1]} : vector<8x96xf32> to vector<8x32xf32>
    %26 = arith.addf %25, %9 : vector<8x32xf32>
    %27 = arith.mulf %22, %26 : vector<8x32xf32>
    %28 = arith.addf %24, %27 : vector<8x32xf32>
    %29 = math.tanh %28 : vector<8x32xf32>
    %cst_15 = arith.constant 1.000000e+00 : f32
    %30 = vector.broadcast %cst_15 : f32 to vector<8x32xf32>
    %31 = arith.subf %30, %23 : vector<8x32xf32>
    %32 = arith.mulf %31, %29 : vector<8x32xf32>
    %33 = arith.mulf %23, %11 : vector<8x32xf32>
    %34 = arith.addf %32, %33 : vector<8x32xf32>
    %c0_i32 = arith.constant 0 : i32
    %35 = vector.broadcast %c0_i32 : i32 to vector<8x1xi32>
    %36 = arith.cmpi eq, %10, %35 : vector<8x1xi32>
    %37 = vector.shape_cast %36 : vector<8x1xi1> to vector<8x1xi1>
    %38 = vector.broadcast %37 : vector<8x1xi1> to vector<8x32xi1>
    %39 = arith.select %38, %34, %12 : vector<8x32xi1>, vector<8x32xf32>
    %40 = vector.extract_strided_slice %5 {offsets = [8, 0], sizes = [8, 96], strides = [1, 1]} : vector<64x96xf32> to vector<8x96xf32>
    %cst_16 = arith.constant dense<0.000000e+00> : vector<8x96xf32>
    %41 = tpu.matmul %34, %6, %cst_16 {dimension_numbers = #tpu.dot_dimension_numbers<[1], [0], [0], [1], [0, 0, 1, 1], [], []>} : vector<8x32xf32>, vector<32x96xf32>, vector<8x96xf32> -> vector<8x96xf32>
    %42 = arith.addf %40, %41 : vector<8x96xf32>
    %43 = vector.extract_strided_slice %42 {offsets = [0, 0], sizes = [8, 64], strides = [1, 1]} : vector<8x96xf32> to vector<8x64xf32>
    %44 = arith.negf %43 : vector<8x64xf32>
    %45 = math.exp %44 : vector<8x64xf32>
    %cst_17 = arith.constant 1.000000e+00 : f32
    %46 = vector.broadcast %cst_17 : f32 to vector<8x64xf32>
    %47 = arith.addf %46, %45 : vector<8x64xf32>
    %48 = arith.divf %46, %47 : vector<8x64xf32>
    %49 = vector.extract_strided_slice %48 {offsets = [0, 0], sizes = [8, 32], strides = [1, 1]} : vector<8x64xf32> to vector<8x32xf32>
    %50 = vector.extract_strided_slice %48 {offsets = [0, 32], sizes = [8, 32], strides = [1, 1]} : vector<8x64xf32> to vector<8x32xf32>
    %51 = vector.extract_strided_slice %40 {offsets = [0, 64], sizes = [8, 32], strides = [1, 1]} : vector<8x96xf32> to vector<8x32xf32>
    %52 = vector.extract_strided_slice %41 {offsets = [0, 64], sizes = [8, 32], strides = [1, 1]} : vector<8x96xf32> to vector<8x32xf32>
    %53 = arith.addf %52, %9 : vector<8x32xf32>
    %54 = arith.mulf %49, %53 : vector<8x32xf32>
    %55 = arith.addf %51, %54 : vector<8x32xf32>
    %56 = math.tanh %55 : vector<8x32xf32>
    %cst_18 = arith.constant 1.000000e+00 : f32
    %57 = vector.broadcast %cst_18 : f32 to vector<8x32xf32>
    %58 = arith.subf %57, %50 : vector<8x32xf32>
    %59 = arith.mulf %58, %56 : vector<8x32xf32>
    %60 = arith.mulf %50, %34 : vector<8x32xf32>
    %61 = arith.addf %59, %60 : vector<8x32xf32>
    %c1_i32 = arith.constant 1 : i32
    %62 = vector.broadcast %c1_i32 : i32 to vector<8x1xi32>
    %63 = arith.cmpi eq, %10, %62 : vector<8x1xi32>
    %64 = vector.shape_cast %63 : vector<8x1xi1> to vector<8x1xi1>
    %65 = vector.broadcast %64 : vector<8x1xi1> to vector<8x32xi1>
    %66 = arith.select %65, %61, %39 : vector<8x32xi1>, vector<8x32xf32>
    %67 = vector.extract_strided_slice %5 {offsets = [16, 0], sizes = [8, 96], strides = [1, 1]} : vector<64x96xf32> to vector<8x96xf32>
    %cst_19 = arith.constant dense<0.000000e+00> : vector<8x96xf32>
    %68 = tpu.matmul %61, %6, %cst_19 {dimension_numbers = #tpu.dot_dimension_numbers<[1], [0], [0], [1], [0, 0, 1, 1], [], []>} : vector<8x32xf32>, vector<32x96xf32>, vector<8x96xf32> -> vector<8x96xf32>
    %69 = arith.addf %67, %68 : vector<8x96xf32>
    %70 = vector.extract_strided_slice %69 {offsets = [0, 0], sizes = [8, 64], strides = [1, 1]} : vector<8x96xf32> to vector<8x64xf32>
    %71 = arith.negf %70 : vector<8x64xf32>
    %72 = math.exp %71 : vector<8x64xf32>
    %cst_20 = arith.constant 1.000000e+00 : f32
    %73 = vector.broadcast %cst_20 : f32 to vector<8x64xf32>
    %74 = arith.addf %73, %72 : vector<8x64xf32>
    %75 = arith.divf %73, %74 : vector<8x64xf32>
    %76 = vector.extract_strided_slice %75 {offsets = [0, 0], sizes = [8, 32], strides = [1, 1]} : vector<8x64xf32> to vector<8x32xf32>
    %77 = vector.extract_strided_slice %75 {offsets = [0, 32], sizes = [8, 32], strides = [1, 1]} : vector<8x64xf32> to vector<8x32xf32>
    %78 = vector.extract_strided_slice %67 {offsets = [0, 64], sizes = [8, 32], strides = [1, 1]} : vector<8x96xf32> to vector<8x32xf32>
    %79 = vector.extract_strided_slice %68 {offsets = [0, 64], sizes = [8, 32], strides = [1, 1]} : vector<8x96xf32> to vector<8x32xf32>
    %80 = arith.addf %79, %9 : vector<8x32xf32>
    %81 = arith.mulf %76, %80 : vector<8x32xf32>
    %82 = arith.addf %78, %81 : vector<8x32xf32>
    %83 = math.tanh %82 : vector<8x32xf32>
    %cst_21 = arith.constant 1.000000e+00 : f32
    %84 = vector.broadcast %cst_21 : f32 to vector<8x32xf32>
    %85 = arith.subf %84, %77 : vector<8x32xf32>
    %86 = arith.mulf %85, %83 : vector<8x32xf32>
    %87 = arith.mulf %77, %61 : vector<8x32xf32>
    %88 = arith.addf %86, %87 : vector<8x32xf32>
    %c2_i32 = arith.constant 2 : i32
    %89 = vector.broadcast %c2_i32 : i32 to vector<8x1xi32>
    %90 = arith.cmpi eq, %10, %89 : vector<8x1xi32>
    %91 = vector.shape_cast %90 : vector<8x1xi1> to vector<8x1xi1>
    %92 = vector.broadcast %91 : vector<8x1xi1> to vector<8x32xi1>
    %93 = arith.select %92, %88, %66 : vector<8x32xi1>, vector<8x32xf32>
    %94 = vector.extract_strided_slice %5 {offsets = [24, 0], sizes = [8, 96], strides = [1, 1]} : vector<64x96xf32> to vector<8x96xf32>
    %cst_22 = arith.constant dense<0.000000e+00> : vector<8x96xf32>
    %95 = tpu.matmul %88, %6, %cst_22 {dimension_numbers = #tpu.dot_dimension_numbers<[1], [0], [0], [1], [0, 0, 1, 1], [], []>} : vector<8x32xf32>, vector<32x96xf32>, vector<8x96xf32> -> vector<8x96xf32>
    %96 = arith.addf %94, %95 : vector<8x96xf32>
    %97 = vector.extract_strided_slice %96 {offsets = [0, 0], sizes = [8, 64], strides = [1, 1]} : vector<8x96xf32> to vector<8x64xf32>
    %98 = arith.negf %97 : vector<8x64xf32>
    %99 = math.exp %98 : vector<8x64xf32>
    %cst_23 = arith.constant 1.000000e+00 : f32
    %100 = vector.broadcast %cst_23 : f32 to vector<8x64xf32>
    %101 = arith.addf %100, %99 : vector<8x64xf32>
    %102 = arith.divf %100, %101 : vector<8x64xf32>
    %103 = vector.extract_strided_slice %102 {offsets = [0, 0], sizes = [8, 32], strides = [1, 1]} : vector<8x64xf32> to vector<8x32xf32>
    %104 = vector.extract_strided_slice %102 {offsets = [0, 32], sizes = [8, 32], strides = [1, 1]} : vector<8x64xf32> to vector<8x32xf32>
    %105 = vector.extract_strided_slice %94 {offsets = [0, 64], sizes = [8, 32], strides = [1, 1]} : vector<8x96xf32> to vector<8x32xf32>
    %106 = vector.extract_strided_slice %95 {offsets = [0, 64], sizes = [8, 32], strides = [1, 1]} : vector<8x96xf32> to vector<8x32xf32>
    %107 = arith.addf %106, %9 : vector<8x32xf32>
    %108 = arith.mulf %103, %107 : vector<8x32xf32>
    %109 = arith.addf %105, %108 : vector<8x32xf32>
    %110 = math.tanh %109 : vector<8x32xf32>
    %cst_24 = arith.constant 1.000000e+00 : f32
    %111 = vector.broadcast %cst_24 : f32 to vector<8x32xf32>
    %112 = arith.subf %111, %104 : vector<8x32xf32>
    %113 = arith.mulf %112, %110 : vector<8x32xf32>
    %114 = arith.mulf %104, %88 : vector<8x32xf32>
    %115 = arith.addf %113, %114 : vector<8x32xf32>
    %c3_i32 = arith.constant 3 : i32
    %116 = vector.broadcast %c3_i32 : i32 to vector<8x1xi32>
    %117 = arith.cmpi eq, %10, %116 : vector<8x1xi32>
    %118 = vector.shape_cast %117 : vector<8x1xi1> to vector<8x1xi1>
    %119 = vector.broadcast %118 : vector<8x1xi1> to vector<8x32xi1>
    %120 = arith.select %119, %115, %93 : vector<8x32xi1>, vector<8x32xf32>
    %121 = vector.extract_strided_slice %5 {offsets = [32, 0], sizes = [8, 96], strides = [1, 1]} : vector<64x96xf32> to vector<8x96xf32>
    %cst_25 = arith.constant dense<0.000000e+00> : vector<8x96xf32>
    %122 = tpu.matmul %115, %6, %cst_25 {dimension_numbers = #tpu.dot_dimension_numbers<[1], [0], [0], [1], [0, 0, 1, 1], [], []>} : vector<8x32xf32>, vector<32x96xf32>, vector<8x96xf32> -> vector<8x96xf32>
    %123 = arith.addf %121, %122 : vector<8x96xf32>
    %124 = vector.extract_strided_slice %123 {offsets = [0, 0], sizes = [8, 64], strides = [1, 1]} : vector<8x96xf32> to vector<8x64xf32>
    %125 = arith.negf %124 : vector<8x64xf32>
    %126 = math.exp %125 : vector<8x64xf32>
    %cst_26 = arith.constant 1.000000e+00 : f32
    %127 = vector.broadcast %cst_26 : f32 to vector<8x64xf32>
    %128 = arith.addf %127, %126 : vector<8x64xf32>
    %129 = arith.divf %127, %128 : vector<8x64xf32>
    %130 = vector.extract_strided_slice %129 {offsets = [0, 0], sizes = [8, 32], strides = [1, 1]} : vector<8x64xf32> to vector<8x32xf32>
    %131 = vector.extract_strided_slice %129 {offsets = [0, 32], sizes = [8, 32], strides = [1, 1]} : vector<8x64xf32> to vector<8x32xf32>
    %132 = vector.extract_strided_slice %121 {offsets = [0, 64], sizes = [8, 32], strides = [1, 1]} : vector<8x96xf32> to vector<8x32xf32>
    %133 = vector.extract_strided_slice %122 {offsets = [0, 64], sizes = [8, 32], strides = [1, 1]} : vector<8x96xf32> to vector<8x32xf32>
    %134 = arith.addf %133, %9 : vector<8x32xf32>
    %135 = arith.mulf %130, %134 : vector<8x32xf32>
    %136 = arith.addf %132, %135 : vector<8x32xf32>
    %137 = math.tanh %136 : vector<8x32xf32>
    %cst_27 = arith.constant 1.000000e+00 : f32
    %138 = vector.broadcast %cst_27 : f32 to vector<8x32xf32>
    %139 = arith.subf %138, %131 : vector<8x32xf32>
    %140 = arith.mulf %139, %137 : vector<8x32xf32>
    %141 = arith.mulf %131, %115 : vector<8x32xf32>
    %142 = arith.addf %140, %141 : vector<8x32xf32>
    %c4_i32 = arith.constant 4 : i32
    %143 = vector.broadcast %c4_i32 : i32 to vector<8x1xi32>
    %144 = arith.cmpi eq, %10, %143 : vector<8x1xi32>
    %145 = vector.shape_cast %144 : vector<8x1xi1> to vector<8x1xi1>
    %146 = vector.broadcast %145 : vector<8x1xi1> to vector<8x32xi1>
    %147 = arith.select %146, %142, %120 : vector<8x32xi1>, vector<8x32xf32>
    %148 = vector.extract_strided_slice %5 {offsets = [40, 0], sizes = [8, 96], strides = [1, 1]} : vector<64x96xf32> to vector<8x96xf32>
    %cst_28 = arith.constant dense<0.000000e+00> : vector<8x96xf32>
    %149 = tpu.matmul %142, %6, %cst_28 {dimension_numbers = #tpu.dot_dimension_numbers<[1], [0], [0], [1], [0, 0, 1, 1], [], []>} : vector<8x32xf32>, vector<32x96xf32>, vector<8x96xf32> -> vector<8x96xf32>
    %150 = arith.addf %148, %149 : vector<8x96xf32>
    %151 = vector.extract_strided_slice %150 {offsets = [0, 0], sizes = [8, 64], strides = [1, 1]} : vector<8x96xf32> to vector<8x64xf32>
    %152 = arith.negf %151 : vector<8x64xf32>
    %153 = math.exp %152 : vector<8x64xf32>
    %cst_29 = arith.constant 1.000000e+00 : f32
    %154 = vector.broadcast %cst_29 : f32 to vector<8x64xf32>
    %155 = arith.addf %154, %153 : vector<8x64xf32>
    %156 = arith.divf %154, %155 : vector<8x64xf32>
    %157 = vector.extract_strided_slice %156 {offsets = [0, 0], sizes = [8, 32], strides = [1, 1]} : vector<8x64xf32> to vector<8x32xf32>
    %158 = vector.extract_strided_slice %156 {offsets = [0, 32], sizes = [8, 32], strides = [1, 1]} : vector<8x64xf32> to vector<8x32xf32>
    %159 = vector.extract_strided_slice %148 {offsets = [0, 64], sizes = [8, 32], strides = [1, 1]} : vector<8x96xf32> to vector<8x32xf32>
    %160 = vector.extract_strided_slice %149 {offsets = [0, 64], sizes = [8, 32], strides = [1, 1]} : vector<8x96xf32> to vector<8x32xf32>
    %161 = arith.addf %160, %9 : vector<8x32xf32>
    %162 = arith.mulf %157, %161 : vector<8x32xf32>
    %163 = arith.addf %159, %162 : vector<8x32xf32>
    %164 = math.tanh %163 : vector<8x32xf32>
    %cst_30 = arith.constant 1.000000e+00 : f32
    %165 = vector.broadcast %cst_30 : f32 to vector<8x32xf32>
    %166 = arith.subf %165, %158 : vector<8x32xf32>
    %167 = arith.mulf %166, %164 : vector<8x32xf32>
    %168 = arith.mulf %158, %142 : vector<8x32xf32>
    %169 = arith.addf %167, %168 : vector<8x32xf32>
    %c5_i32 = arith.constant 5 : i32
    %170 = vector.broadcast %c5_i32 : i32 to vector<8x1xi32>
    %171 = arith.cmpi eq, %10, %170 : vector<8x1xi32>
    %172 = vector.shape_cast %171 : vector<8x1xi1> to vector<8x1xi1>
    %173 = vector.broadcast %172 : vector<8x1xi1> to vector<8x32xi1>
    %174 = arith.select %173, %169, %147 : vector<8x32xi1>, vector<8x32xf32>
    %175 = vector.extract_strided_slice %5 {offsets = [48, 0], sizes = [8, 96], strides = [1, 1]} : vector<64x96xf32> to vector<8x96xf32>
    %cst_31 = arith.constant dense<0.000000e+00> : vector<8x96xf32>
    %176 = tpu.matmul %169, %6, %cst_31 {dimension_numbers = #tpu.dot_dimension_numbers<[1], [0], [0], [1], [0, 0, 1, 1], [], []>} : vector<8x32xf32>, vector<32x96xf32>, vector<8x96xf32> -> vector<8x96xf32>
    %177 = arith.addf %175, %176 : vector<8x96xf32>
    %178 = vector.extract_strided_slice %177 {offsets = [0, 0], sizes = [8, 64], strides = [1, 1]} : vector<8x96xf32> to vector<8x64xf32>
    %179 = arith.negf %178 : vector<8x64xf32>
    %180 = math.exp %179 : vector<8x64xf32>
    %cst_32 = arith.constant 1.000000e+00 : f32
    %181 = vector.broadcast %cst_32 : f32 to vector<8x64xf32>
    %182 = arith.addf %181, %180 : vector<8x64xf32>
    %183 = arith.divf %181, %182 : vector<8x64xf32>
    %184 = vector.extract_strided_slice %183 {offsets = [0, 0], sizes = [8, 32], strides = [1, 1]} : vector<8x64xf32> to vector<8x32xf32>
    %185 = vector.extract_strided_slice %183 {offsets = [0, 32], sizes = [8, 32], strides = [1, 1]} : vector<8x64xf32> to vector<8x32xf32>
    %186 = vector.extract_strided_slice %175 {offsets = [0, 64], sizes = [8, 32], strides = [1, 1]} : vector<8x96xf32> to vector<8x32xf32>
    %187 = vector.extract_strided_slice %176 {offsets = [0, 64], sizes = [8, 32], strides = [1, 1]} : vector<8x96xf32> to vector<8x32xf32>
    %188 = arith.addf %187, %9 : vector<8x32xf32>
    %189 = arith.mulf %184, %188 : vector<8x32xf32>
    %190 = arith.addf %186, %189 : vector<8x32xf32>
    %191 = math.tanh %190 : vector<8x32xf32>
    %cst_33 = arith.constant 1.000000e+00 : f32
    %192 = vector.broadcast %cst_33 : f32 to vector<8x32xf32>
    %193 = arith.subf %192, %185 : vector<8x32xf32>
    %194 = arith.mulf %193, %191 : vector<8x32xf32>
    %195 = arith.mulf %185, %169 : vector<8x32xf32>
    %196 = arith.addf %194, %195 : vector<8x32xf32>
    %c6_i32 = arith.constant 6 : i32
    %197 = vector.broadcast %c6_i32 : i32 to vector<8x1xi32>
    %198 = arith.cmpi eq, %10, %197 : vector<8x1xi32>
    %199 = vector.shape_cast %198 : vector<8x1xi1> to vector<8x1xi1>
    %200 = vector.broadcast %199 : vector<8x1xi1> to vector<8x32xi1>
    %201 = arith.select %200, %196, %174 : vector<8x32xi1>, vector<8x32xf32>
    %202 = vector.extract_strided_slice %5 {offsets = [56, 0], sizes = [8, 96], strides = [1, 1]} : vector<64x96xf32> to vector<8x96xf32>
    %cst_34 = arith.constant dense<0.000000e+00> : vector<8x96xf32>
    %203 = tpu.matmul %196, %6, %cst_34 {dimension_numbers = #tpu.dot_dimension_numbers<[1], [0], [0], [1], [0, 0, 1, 1], [], []>} : vector<8x32xf32>, vector<32x96xf32>, vector<8x96xf32> -> vector<8x96xf32>
    %204 = arith.addf %202, %203 : vector<8x96xf32>
    %205 = vector.extract_strided_slice %204 {offsets = [0, 0], sizes = [8, 64], strides = [1, 1]} : vector<8x96xf32> to vector<8x64xf32>
    %206 = arith.negf %205 : vector<8x64xf32>
    %207 = math.exp %206 : vector<8x64xf32>
    %cst_35 = arith.constant 1.000000e+00 : f32
    %208 = vector.broadcast %cst_35 : f32 to vector<8x64xf32>
    %209 = arith.addf %208, %207 : vector<8x64xf32>
    %210 = arith.divf %208, %209 : vector<8x64xf32>
    %211 = vector.extract_strided_slice %210 {offsets = [0, 0], sizes = [8, 32], strides = [1, 1]} : vector<8x64xf32> to vector<8x32xf32>
    %212 = vector.extract_strided_slice %210 {offsets = [0, 32], sizes = [8, 32], strides = [1, 1]} : vector<8x64xf32> to vector<8x32xf32>
    %213 = vector.extract_strided_slice %202 {offsets = [0, 64], sizes = [8, 32], strides = [1, 1]} : vector<8x96xf32> to vector<8x32xf32>
    %214 = vector.extract_strided_slice %203 {offsets = [0, 64], sizes = [8, 32], strides = [1, 1]} : vector<8x96xf32> to vector<8x32xf32>
    %215 = arith.addf %214, %9 : vector<8x32xf32>
    %216 = arith.mulf %211, %215 : vector<8x32xf32>
    %217 = arith.addf %213, %216 : vector<8x32xf32>
    %218 = math.tanh %217 : vector<8x32xf32>
    %cst_36 = arith.constant 1.000000e+00 : f32
    %219 = vector.broadcast %cst_36 : f32 to vector<8x32xf32>
    %220 = arith.subf %219, %212 : vector<8x32xf32>
    %221 = arith.mulf %220, %218 : vector<8x32xf32>
    %222 = arith.mulf %212, %196 : vector<8x32xf32>
    %223 = arith.addf %221, %222 : vector<8x32xf32>
    %c7_i32 = arith.constant 7 : i32
    %224 = vector.broadcast %c7_i32 : i32 to vector<8x1xi32>
    %225 = arith.cmpi eq, %10, %224 : vector<8x1xi32>
    %226 = vector.shape_cast %225 : vector<8x1xi1> to vector<8x1xi1>
    %227 = vector.broadcast %226 : vector<8x1xi1> to vector<8x32xi1>
    %228 = arith.select %227, %223, %201 : vector<8x32xi1>, vector<8x32xf32>
    %c0_37 = arith.constant 0 : index
    %c0_38 = arith.constant 0 : index
    %229 = vector.load %arg7[%c0_37, %c0_38] : memref<1x32xf32, #tpu.memory_space<vmem>>, vector<1x32xf32>
    %230 = vector.broadcast %229 : vector<1x32xf32> to vector<8x32xf32>
    %231 = arith.mulf %228, %230 : vector<8x32xf32>
    %cst_39 = arith.constant dense<0.000000e+00> : vector<8xf32>
    %232 = vector.multi_reduction <add>, %231, %cst_39 [1] : vector<8x32xf32> to vector<8xf32>
    %233 = vector.shape_cast %232 : vector<8xf32> to vector<8x1xf32>
    %c0_40 = arith.constant 0 : index
    %c0_41 = arith.constant 0 : index
    %c0_42 = arith.constant 0 : index
    %234 = vector.load %arg6[%c0_40, %c0_41, %c0_42] : memref<8x8x32xf32, #tpu.memory_space<vmem>>, vector<8x8x32xf32>
    %c0_43 = arith.constant 0 : index
    %c0_44 = arith.constant 0 : index
    %235 = vector.load %arg8[%c0_43, %c0_44] : memref<1x32xf32, #tpu.memory_space<vmem>>, vector<1x32xf32>
    %236 = vector.shape_cast %235 : vector<1x32xf32> to vector<1x1x32xf32>
    %237 = vector.broadcast %236 : vector<1x1x32xf32> to vector<8x8x32xf32>
    %238 = arith.mulf %234, %237 : vector<8x8x32xf32>
    %cst_45 = arith.constant dense<0.000000e+00> : vector<8x8xf32>
    %239 = vector.multi_reduction <add>, %238, %cst_45 [2] : vector<8x8x32xf32> to vector<8x8xf32>
    %240 = vector.broadcast %233 : vector<8x1xf32> to vector<8x8xf32>
    %241 = arith.addf %239, %240 : vector<8x8xf32>
    %c0_46 = arith.constant 0 : index
    %c0_47 = arith.constant 0 : index
    %242 = memref.load %arg9[%c0_46, %c0_47] : memref<1x1xf32, #tpu.memory_space<smem>>
    %243 = vector.broadcast %242 : f32 to vector<8x8xf32>
    %244 = arith.addf %241, %243 : vector<8x8xf32>
    %cst_48 = arith.constant dense<0xFF800000> : vector<8xf32>
    %245 = vector.multi_reduction <maximumf>, %244, %cst_48 [1] : vector<8x8xf32> to vector<8xf32>
    %246 = vector.shape_cast %245 : vector<8xf32> to vector<8x1xf32>
    %247 = vector.broadcast %246 : vector<8x1xf32> to vector<8x8xf32>
    %248 = arith.subf %244, %247 : vector<8x8xf32>
    %249 = math.exp %248 : vector<8x8xf32>
    %cst_49 = arith.constant dense<0.000000e+00> : vector<8xf32>
    %250 = vector.multi_reduction <add>, %249, %cst_49 [1] : vector<8x8xf32> to vector<8xf32>
    %251 = vector.shape_cast %250 : vector<8xf32> to vector<8x1xf32>
    %252 = vector.broadcast %251 : vector<8x1xf32> to vector<8x8xf32>
    %253 = arith.divf %249, %252 : vector<8x8xf32>
    %c0_50 = arith.constant 0 : index
    %c0_51 = arith.constant 0 : index
    %254 = vector.load %arg10[%c0_50, %c0_51] : memref<8x8xf32, #tpu.memory_space<vmem>>, vector<8x8xf32>
    tpu.vector_store %arg10[%c0_50, %c0_51], %253 {strides = array<i32>} : memref<8x8xf32, #tpu.memory_space<vmem>>, vector<8x8xf32>,
    return
  }
}

</mosaic_0001>

<bundles_post_ra>
// kernel: tpu_custom_call.1
= control target key start
LH: loop header
LB: loop body
LE: loop exit
PB: predicated region body
PF: predicated region fallthrough
CT: control target
= control target key end

     0   :  { %vm54_vm0 = vcmask 130048   ;;  %v1908_v3 = vmov 0.0|0.0   ;;  %vm1909_vm1 = vmmov 0   ;;  %v1910_v10 = vmov 0.0   ;;  %s1911_s28 = smov 64   ;;  %s2392_s0 = inlined_call_operand.vmem [shape: f32[64,16], index: 0, kind: input, shape index: {}]   ;;  %s2393_s1 = inlined_call_operand.vmem [shape: f32[16,96], index: 1, kind: input, shape index: {}]   ;;  %s2394_s2 = inlined_call_operand.vmem [shape: f32[32,96], index: 2, kind: input, shape index: {}]   ;;  %s2395_s3 = inlined_call_operand.vmem [shape: f32[1,96], index: 3, kind: input, shape index: {}]   ;;  %s2396_s4 = inlined_call_operand.vmem [shape: f32[1,32], index: 4, kind: input, shape index: {}]   ;;  %s2397_s5 = inlined_call_operand.vmem [shape: s32[8,1], index: 5, kind: input, shape index: {}]   ;;  %s2398_s6 = inlined_call_operand.vmem [shape: f32[8,8,32], index: 6, kind: input, shape index: {}]   ;;  %s2399_s7 = inlined_call_operand.vmem [shape: f32[1,32], index: 7, kind: input, shape index: {}]   ;;  %s2400_s8 = inlined_call_operand.vmem [shape: f32[1,32], index: 8, kind: input, shape index: {}]   ;;  %s2401_s9 = inlined_call_operand.<no memory space> [shape: f32[1,1], index: 9, kind: input, shape index: {}]   ;;  %s2402_s10 = inlined_call_operand.hbm [shape: f32[8,8], index: 10, kind: output, shape index: {}]  }
   0x1   :  { %v45_v0 = vld [vmem:[%s2393_s1] sm:$0xff]  ;;  %v46_v1 = vld [vmem:[%s2393_s1 + $0x8] sm:$0xff]  ;;  %1746 = vmatprep.subr.bf16.mxu1 %v1908_v3  ;;  %v186_v8 = vld [vmem:[%s2394_s2 + $0x10] sm:$0xff]  ;;  %1662 = vmatprep.mubr.msk.f32.mxu1 %vm1909_vm1, %v1910_v10 }
   0x2   :  { %v184_v2 = vld [vmem:[%s2394_s2] sm:$0xff]  ;;  %v1742_v4 = vpack.c.bf16 %v46_v1, %v45_v0  ;;  %v185_v5 = vld [vmem:[%s2394_s2 + $0x8] sm:$0xff]  ;;  %v187_v9 = vld [vmem:[%s2394_s2 + $0x18] sm:$0xff] }
   0x3   :  { %v37_v6 = vld [vmem:[%s2392_s0] sm:$0xff]  ;;  %v1987_v7 = vpack.c.bf16 %v185_v5, %v184_v2 }
   0x4   :  { %1642 = vmatprep.mubr.msk.f32.mxu0 %vm54_vm0, %v37_v6  ;;  %v1570_v11 = vld [vmem:[%s2396_s4] ss:$0 sm:$0xff]  ;;  %1743 = vmatprep.subr.bf16.mxu0 %v1742_v4 }
   0x5   :  { %276 = vrot.lane.b32.xlu0 %v1570_v11, %s1911_s28 }
   0x6   :  { %16 = vsyncpa [#allocation4], 0  ;;  %1748 = vmatpush3.bf16.msra.mxu1 %v1987_v7  ;;  %1745 = vmatpush3.bf16.msra.mxu0 %v1742_v4  ;;  %v38_v12 = vld [vmem:[%s2392_s0 + $0x8] sm:$0xff]  ;;  %v2006_v13 = vpack.c.bf16 %v187_v9, %v186_v8  ;;  %v2031_v20 = vld [vmem:[%s2395_s3] ss:$0 sm:$0xff]  ;;  %s1912_s11 = smov 96  }
   0x7   :  { %1749 = vmatprep.subr.bf16.mxu1 %v1908_v3  ;;  %1758 = vmatprep.subr.bf16.mxu0 %v1908_v3  ;;  %vm195_vm2 = vcmask 261120   ;;  %v39_v51 = vld [vmem:[%s2392_s0 + $0x10] sm:$0xff]  ;;  %v40_v52 = vld [vmem:[%s2392_s0 + $0x18] sm:$0xff]  ;;  %v41_v53 = vld [vmem:[%s2392_s0 + $0x20] sm:$0xff]  ;;  %s1914_s24 = smov 32  }
   0x8   :  { %v42_v54 = vld [vmem:[%s2392_s0 + $0x28] sm:$0xff]  ;;  %v43_v55 = vld [vmem:[%s2392_s0 + $0x30] sm:$0xff]  ;;  %v44_v56 = vld [vmem:[%s2392_s0 + $0x38] sm:$0xff] }
   0x9   :  { %1643 = vmatmul.mubr.msk.f32.vlgmr.msra.gmra.mrb[0].mxu0 %vm54_vm0, %v38_v12 }
   0xa   :  { %1751 = vmatpush3.bf16.msra.mxu1 %v2006_v13  ;;  %1760 = vmatpush3.bf16.msra.mxu0 %v1987_v7 }
   0xb   :  { %1752 = vmatprep.subr.bf16.mxu1 %v1908_v3  ;;  %1761 = vmatprep.subr.bf16.mxu0 %v1908_v3 }
   0xc   :  { %1645 = vmatprep.mubr.msk.f32.mxu0 %vm54_vm0, %v39_v51 }
   0xd   :  { %1663 = vmatmul.mubr.f32.vlgmr.msra.gmra.mrb[0].mxu1 %v1910_v10  ;;  %1646 = vmatmul.mubr.msk.f32.gmra.mrb[2].mxu0 %vm54_vm0, %v40_v52 }
   0xe   :  { %1754 = vmatpush3.bf16.msra.mxu1 %v1987_v7  ;;  %1673 = vmatprep.mubr.msk.f32.mxu1 %vm1909_vm1, %v1910_v10 }
   0xf   :  { %1755 = vmatprep.subr.bf16.mxu1 %v1908_v3  ;;  %1763 = vmatpush3.bf16.msra.mxu0 %v2006_v13 }
  0x10   :  { %1770 = vmatprep.subr.bf16.mxu0 %v1908_v3  ;;  %1648 = vmatprep.mubr.msk.f32.mxu0 %vm54_vm0, %v41_v53 }
  0x11   :  { %1649 = vmatmul.mubr.msk.f32.gmra.mrb[4].mxu0 %vm54_vm0, %v42_v54 }
  0x12   :  { %1757 = vmatpush3.bf16.msra.mxu1 %v2006_v13  ;;  %1651 = vmatprep.mubr.msk.f32.mxu0 %vm54_vm0, %v43_v55 }
  0x13   :  { %1764 = vmatprep.subr.bf16.mxu1 %v1908_v3 }
  0x15   :  { %1652 = vmatmul.mubr.msk.f32.gmra.mrb[6].mxu0 %vm54_vm0, %v44_v56 }
  0x16   :  { %1684 = vmatprep.mubr.msk.f32.mxu0 %vm1909_vm1, %v1910_v10 }
  0x77   :  { %v2024_v16 = vpop.permute.xlu0 %276 }
  0xdc   :  { %v1644_v14 = vpop.f32.mrb[0].mxu0 }
  0xdd   :  { %v145_v15 = vpop.f32.mrb[1].mxu0  ;;  %v151_v41 = vadd.f32 %v1644_v14, %v2031_v20 }
  0xde   :  { %v146_v21 = vadd.f32 %v2031_v20, %v145_v15 }
  0xe0   :  { %v265_v17 = vpop.f32.mrb[0].mxu1  ;;  %v1647_v63 = vpop.f32.mrb[2].mxu0 }
  0xe1   :  { %v279_v18 = vadd.f32 %v2024_v16, %v265_v17  ;;  %v1664_v19 = vpop.f32.mrb[1].mxu1  ;;  %v269_v22 = vadd.f32 %v265_v17, %v146_v21  ;;  %v155_v0 = vpop.f32.mrb[3].mxu0 }
  0xe2   :  { %v156_v12 = vadd.f32 %v2031_v20, %v155_v0 }
  0xe3   :  { %281 = vrot.lane.b32.xlu0 %v279_v18, %s1911_s28  ;;  %v1571_v23 = vmul.f32 -1.442695, %v269_v22 }
  0xe4   :  { %v2083_v1 = vpop.f32.mrb[4].mxu0 }
  0xe5   :  { %1804 = vpow2.f32 %v1571_v23  ;;  %v2085_v2 = vpop.f32.mrb[5].mxu0 }
  0xe6   :  { %v166_v56 = vadd.f32 %v2031_v20, %v2085_v2 }
  0xe8   :  { %v2087_v4 = vpop.f32.mrb[6].mxu0 }
  0xe9   :  { %v2089_v5 = vpop.f32.mrb[7].mxu0 }
  0xef   :  { %v1805_v24 = vpop.eup %1804 }
  0xf0   :  { %v273_v25 = vadd.f32 1.0, %v1805_v24 }
  0xf2   :  { %1806 = vrcp.f32 %v273_v25 }
  0xfc   :  { %v1807_v26 = vpop.eup %1806 }
  0xfd   :  { %v291_v32 = vsub.f32 1.0, %v1807_v26  ;;  %v297_v34 = vmul.f32 0.0, %v1807_v26 }
 0x155   :  { %v282_v27 = vpop.permute.xlu0 %281 }
 0x156   :  { %v284_v28 = vmul.f32 %v1807_v26, %v282_v27 }
 0x158   :  { %286 = vrot.lane.b32.xlu1 %v284_v28, %s1911_s28 }
 0x1ca   :  { %v287_v29 = vpop.permute.xlu1 %286 }
 0x1cb   :  { %v289_v30 = vadd.f32 %v287_v29, %v146_v21 }
 0x1cd   :  { %1808 = vtanh.f32 %v289_v30 }
 0x1d7   :  { %v1809_v31 = vpop.eup %1808 }
 0x1d8   :  { %293 = vrot.lane.b32.xlu1 %v1809_v31, %s1912_s11 }
 0x24a   :  { %v294_v33 = vpop.permute.xlu1 %293 }
 0x24b   :  { %v296_v35 = vmul.f32 %v294_v33, %v291_v32 }
 0x24d   :  { %v2036_v36 = vadd.f32 %v297_v34, %v296_v35  ;;  %v161_v35 = vadd.f32 %v1647_v63, %v2031_v20 }
 0x24f   :  { %307 = vrot.lane.b32.xlu0 %v2036_v36, %s1912_s11 }
 0x2c1   :  { %v308_v37 = vpop.permute.xlu0 %307 }
 0x2c2   :  { %1674 = vmatmul.mubr.msk.f32.vlgmr.msra.gmra.mrb[2].mxu1 %vm195_vm2, %v308_v37 }
 0x2c3   :  { %1766 = vmatpush3.bf16.msra.mxu1 %v1987_v7  ;;  %1695 = vmatprep.mubr.msk.f32.mxu1 %vm1909_vm1, %v1910_v10 }
 0x2c4   :  { %1767 = vmatprep.subr.bf16.mxu1 %v1908_v3 }
 0x2c7   :  { %1769 = vmatpush3.bf16.msra.mxu1 %v2006_v13 }
 0x2c8   :  { %1776 = vmatprep.subr.bf16.mxu1 %v1908_v3 }
 0x395   :  { %v377_v38 = vpop.f32.mrb[2].mxu1 }
 0x396   :  { %v388_v39 = vadd.f32 %v377_v38, %v2024_v16  ;;  %v1675_v40 = vpop.f32.mrb[3].mxu1  ;;  %v381_v42 = vadd.f32 %v377_v38, %v151_v41 }
 0x398   :  { %390 = vrot.lane.b32.xlu1 %v388_v39, %s1911_s28  ;;  %v1573_v43 = vmul.f32 -1.442695, %v381_v42 }
 0x39a   :  { %1810 = vpow2.f32 %v1573_v43 }
 0x3a4   :  { %v1811_v44 = vpop.eup %1810 }
 0x3a5   :  { %v385_v45 = vadd.f32 1.0, %v1811_v44 }
 0x3a7   :  { %1812 = vrcp.f32 %v385_v45 }
 0x3b1   :  { %v1813_v46 = vpop.eup %1812 }
 0x3b2   :  { %v400_v58 = vsub.f32 1.0, %v1813_v46  ;;  %v406_v60 = vmul.f32 %v1813_v46, %v2036_v36 }
 0x40a   :  { %v391_v47 = vpop.permute.xlu1 %390 }
 0x40b   :  { %v393_v48 = vmul.f32 %v1813_v46, %v391_v47 }
 0x40d   :  { %395 = vrot.lane.b32.xlu0 %v393_v48, %s1911_s28 }
 0x47f   :  { %v396_v49 = vpop.permute.xlu0 %395 }
 0x480   :  { %v398_v50 = vadd.f32 %v396_v49, %v151_v41 }
 0x482   :  { %1814 = vtanh.f32 %v398_v50 }
 0x48c   :  { %v1815_v57 = vpop.eup %1814 }
 0x48d   :  { %402 = vrot.lane.b32.xlu1 %v1815_v57, %s1912_s11 }
 0x4ff   :  { %v403_v59 = vpop.permute.xlu1 %402 }
 0x500   :  { %v405_v61 = vmul.f32 %v403_v59, %v400_v58 }
 0x502   :  { %v2079_v62 = vadd.f32 %v406_v60, %v405_v61 }
 0x504   :  { %416 = vrot.lane.b32.xlu0 %v2079_v62, %s1912_s11 }
 0x576   :  { %v417_v6 = vpop.permute.xlu0 %416 }
 0x577   :  { %1685 = vmatmul.mubr.msk.f32.vlgmr.msra.gmra.mrb[8].mxu0 %vm195_vm2, %v417_v6 }
 0x578   :  { %1772 = vmatpush3.bf16.msra.mxu0 %v1987_v7  ;;  %1706 = vmatprep.mubr.msk.f32.mxu0 %vm1909_vm1, %v1910_v10 }
 0x579   :  { %1773 = vmatprep.subr.bf16.mxu0 %v1908_v3 }
 0x57c   :  { %1775 = vmatpush3.bf16.msra.mxu0 %v2006_v13 }
 0x57d   :  { %1782 = vmatprep.subr.bf16.mxu0 %v1908_v3 }
 0x64a   :  { %v486_v8 = vpop.f32.mrb[8].mxu0 }
 0x64b   :  { %v497_v9 = vadd.f32 %v486_v8, %v2024_v16  ;;  %v1686_v11 = vpop.f32.mrb[9].mxu0  ;;  %v490_v14 = vadd.f32 %v486_v8, %v156_v12 }
 0x64d   :  { %499 = vrot.lane.b32.xlu1 %v497_v9, %s1911_s28  ;;  %v1575_v15 = vmul.f32 -1.442695, %v490_v14 }
 0x64f   :  { %1816 = vpow2.f32 %v1575_v15 }
 0x659   :  { %v1817_v17 = vpop.eup %1816 }
 0x65a   :  { %v494_v18 = vadd.f32 1.0, %v1817_v17 }
 0x65c   :  { %1818 = vrcp.f32 %v494_v18 }
 0x666   :  { %v1819_v19 = vpop.eup %1818 }
 0x667   :  { %v509_v26 = vsub.f32 1.0, %v1819_v19  ;;  %v515_v28 = vmul.f32 %v1819_v19, %v2079_v62 }
 0x6bf   :  { %v500_v21 = vpop.permute.xlu1 %499 }
 0x6c0   :  { %v502_v22 = vmul.f32 %v1819_v19, %v500_v21 }
 0x6c2   :  { %504 = vrot.lane.b32.xlu0 %v502_v22, %s1911_s28  ;;  %v171_v22 = vadd.f32 %v2083_v1, %v2031_v20 }
 0x734   :  { %v505_v23 = vpop.permute.xlu0 %504 }
 0x735   :  { %v507_v24 = vadd.f32 %v505_v23, %v156_v12 }
 0x737   :  { %1820 = vtanh.f32 %v507_v24 }
 0x741   :  { %v1821_v25 = vpop.eup %1820 }
 0x742   :  { %511 = vrot.lane.b32.xlu1 %v1821_v25, %s1912_s11 }
 0x7b4   :  { %v512_v27 = vpop.permute.xlu1 %511 }
 0x7b5   :  { %v514_v29 = vmul.f32 %v512_v27, %v509_v26 }
 0x7b7   :  { %v2104_v30 = vadd.f32 %v515_v28, %v514_v29 }
 0x7b9   :  { %525 = vrot.lane.b32.xlu0 %v2104_v30, %s1912_s11 }
 0x82b   :  { %v526_v31 = vpop.permute.xlu0 %525 }
 0x82c   :  { %1696 = vmatmul.mubr.msk.f32.vlgmr.msra.gmra.mrb[4].mxu1 %vm195_vm2, %v526_v31 }
 0x82d   :  { %1778 = vmatpush3.bf16.msra.mxu1 %v1987_v7  ;;  %1717 = vmatprep.mubr.msk.f32.mxu1 %vm1909_vm1, %v1910_v10 }
 0x82e   :  { %1779 = vmatprep.subr.bf16.mxu1 %v1908_v3 }
 0x831   :  { %1781 = vmatpush3.bf16.msra.mxu1 %v2006_v13 }
 0x832   :  { %1788 = vmatprep.subr.bf16.mxu1 %v1908_v3 }
 0x8ff   :  { %v595_v32 = vpop.f32.mrb[4].mxu1 }
 0x900   :  { %v606_v33 = vadd.f32 %v595_v32, %v2024_v16  ;;  %v1697_v34 = vpop.f32.mrb[5].mxu1  ;;  %v599_v37 = vadd.f32 %v595_v32, %v161_v35 }
 0x902   :  { %608 = vrot.lane.b32.xlu1 %v606_v33, %s1911_s28  ;;  %v1577_v38 = vmul.f32 -1.442695, %v599_v37 }
 0x904   :  { %1822 = vpow2.f32 %v1577_v38 }
 0x90e   :  { %v1823_v39 = vpop.eup %1822 }
 0x90f   :  { %v603_v40 = vadd.f32 1.0, %v1823_v39  ;;  %v176_v39 = vadd.f32 %v2031_v20, %v2089_v5 }
 0x911   :  { %1824 = vrcp.f32 %v603_v40 }
 0x91b   :  { %v1825_v41 = vpop.eup %1824 }
 0x91c   :  { %v618_v47 = vsub.f32 1.0, %v1825_v41  ;;  %v624_v49 = vmul.f32 %v1825_v41, %v2104_v30 }
 0x974   :  { %v609_v42 = vpop.permute.xlu1 %608 }
 0x975   :  { %v611_v43 = vmul.f32 %v1825_v41, %v609_v42 }
 0x977   :  { %613 = vrot.lane.b32.xlu0 %v611_v43, %s1911_s28 }
 0x9e9   :  { %v614_v44 = vpop.permute.xlu0 %613 }
 0x9ea   :  { %v616_v45 = vadd.f32 %v614_v44, %v161_v35 }
 0x9ec   :  { %1826 = vtanh.f32 %v616_v45 }
 0x9f6   :  { %v1827_v46 = vpop.eup %1826 }
 0x9f7   :  { %620 = vrot.lane.b32.xlu1 %v1827_v46, %s1912_s11 }
 0xa69   :  { %v621_v48 = vpop.permute.xlu1 %620 }
 0xa6a   :  { %v623_v50 = vmul.f32 %v621_v48, %v618_v47 }
 0xa6c   :  { %v2121_v51 = vadd.f32 %v624_v49, %v623_v50 }
 0xa6e   :  { %634 = vrot.lane.b32.xlu0 %v2121_v51, %s1912_s11 }
 0xae0   :  { %v635_v52 = vpop.permute.xlu0 %634 }
 0xae1   :  { %1707 = vmatmul.mubr.msk.f32.vlgmr.msra.gmra.mrb[10].mxu0 %vm195_vm2, %v635_v52 }
 0xae2   :  { %1784 = vmatpush3.bf16.msra.mxu0 %v1987_v7  ;;  %1728 = vmatprep.mubr.msk.f32.mxu0 %vm1909_vm1, %v1910_v10 }
 0xae3   :  { %1785 = vmatprep.subr.bf16.mxu0 %v1908_v3 }
 0xae6   :  { %1787 = vmatpush3.bf16.msra.mxu0 %v2006_v13 }
 0xbb4   :  { %v704_v53 = vpop.f32.mrb[10].mxu0 }
 0xbb5   :  { %v715_v54 = vadd.f32 %v704_v53, %v2024_v16  ;;  %v1708_v55 = vpop.f32.mrb[11].mxu0  ;;  %v708_v57 = vadd.f32 %v704_v53, %v166_v56 }
 0xbb7   :  { %717 = vrot.lane.b32.xlu1 %v715_v54, %s1911_s28  ;;  %v1579_v58 = vmul.f32 -1.442695, %v708_v57  ;;  %v194_v57 = vld [vmem:[%s2397_s5] sm:$0xff] }
 0xbb8   :  { %vm299_vm3 = vcmp.eq.s32.totalorder %v194_v57, 0  ;;  %vm517_vm4 = vcmp.eq.s32.totalorder %v194_v57, 2  ;;  %vm626_vm5 = vcmp.eq.s32.totalorder %v194_v57, 3  ;;  %vm844_vm6 = vcmp.eq.s32.totalorder %v194_v57, 5 }
 0xbb9   :  { %1828 = vpow2.f32 %v1579_v58  ;;  %vm1062_vm7 = vcmp.eq.s32.totalorder %v194_v57, 7  ;;  %vm408_vm8 = vcmp.eq.s32.totalorder %v194_v57, 1  ;;  %vm735_vm9 = vcmp.eq.s32.totalorder %v194_v57, 4 }
 0xbba   :  { %vm953_vm10 = vcmp.eq.s32.totalorder %v194_v57, 6 }
 0xbc3   :  { %v1829_v59 = vpop.eup %1828 }
 0xbc4   :  { %v712_v60 = vadd.f32 1.0, %v1829_v59 }
 0xbc6   :  { %1830 = vrcp.f32 %v712_v60 }
 0xbd0   :  { %v1831_v61 = vpop.eup %1830 }
 0xbd1   :  { %v727_v11 = vsub.f32 1.0, %v1831_v61  ;;  %v733_v2 = vmul.f32 %v1831_v61, %v2121_v51 }
 0xc29   :  { %v718_v63 = vpop.permute.xlu1 %717 }
 0xc2a   :  { %v720_v0 = vmul.f32 %v1831_v61, %v718_v63 }
 0xc2c   :  { %722 = vrot.lane.b32.xlu0 %v720_v0, %s1911_s28 }
 0xc9e   :  { %v723_v6 = vpop.permute.xlu0 %722 }
 0xc9f   :  { %v725_v8 = vadd.f32 %v723_v6, %v166_v56  ;;  %v1913_v56 = vmov 0  }
 0xca0   :  { %1802 = vset.pattern.permute.xlu1 %v1913_v56  ;;  %1803 = vset.pattern.permute.xlu0 %v1913_v56  ;;  %v300_v61 = vsel %vm299_vm3, 1, %v1913_v56  ;;  %v518_v63 = vsel %vm517_vm4, 1, %v1913_v56  ;;  %v627_v0 = vsel %vm626_vm5, 1, %v1913_v56  ;;  %v845_v6 = vsel %vm844_vm6, 1, %v1913_v56 }
 0xca1   :  { %1832 = vtanh.f32 %v725_v8  ;;  %v1063_v8 = vsel %vm1062_vm7, 1, %v1913_v56  ;;  %vm1260_vm4 = vcmask 1042434   ;;  %vm1262_vm5 = vcmask 1043459  }
 0xca2   :  { %vm1264_vm6 = vcmask 1044484   ;;  %vm1266_vm7 = vcmask 1045509  }
 0xcab   :  { %v1833_v9 = vpop.eup %1832 }
 0xcac   :  { %729 = vrot.lane.b32.xlu1 %v1833_v9, %s1912_s11 }
 0xd1e   :  { %v730_v12 = vpop.permute.xlu1 %729 }
 0xd1f   :  { %v732_v14 = vmul.f32 %v730_v12, %v727_v11 }
 0xd21   :  { %v2138_v15 = vadd.f32 %v733_v2, %v732_v14 }
 0xd23   :  { %743 = vrot.lane.b32.xlu0 %v2138_v15, %s1912_s11 }
 0xd95   :  { %v744_v17 = vpop.permute.xlu0 %743 }
 0xd96   :  { %1718 = vmatmul.mubr.msk.f32.vlgmr.msra.gmra.mrb[6].mxu1 %vm195_vm2, %v744_v17 }
 0xd97   :  { %1790 = vmatpush3.bf16.msra.mxu1 %v1987_v7  ;;  %1739 = vmatprep.mubr.msk.f32.mxu1 %vm1909_vm1, %v1910_v10 }
 0xd98   :  { %1791 = vmatprep.subr.bf16.mxu1 %v1908_v3 }
 0xd9b   :  { %1793 = vmatpush3.bf16.msra.mxu1 %v2006_v13 }
 0xe69   :  { %v813_v18 = vpop.f32.mrb[6].mxu1 }
 0xe6a   :  { %v824_v19 = vadd.f32 %v813_v18, %v2024_v16  ;;  %v1719_v21 = vpop.f32.mrb[7].mxu1  ;;  %v817_v23 = vadd.f32 %v813_v18, %v171_v22 }
 0xe6b   :  { %v1586_v21 = vld [vmem:[%s2399_s7] ss:$0 sm:$0xff] }
 0xe6c   :  { %826 = vrot.lane.b32.xlu1 %v824_v19, %s1911_s28  ;;  %v1581_v24 = vmul.f32 -1.442695, %v817_v23  ;;  %v409_v19 = vsel %vm408_vm8, 1, %v1913_v56  ;;  %vm1268_vm8 = vcmask 1046534  }
 0xe6e   :  { %1834 = vpow2.f32 %v1581_v24 }
 0xe78   :  { %v1835_v7 = vpop.eup %1834 }
 0xe79   :  { %v821_v25 = vadd.f32 1.0, %v1835_v7  ;;  %v2187_v7 = vld [vmem:[%s2400_s8] ss:$0 sm:$0xff] }
 0xe7b   :  { %1836 = vrcp.f32 %v821_v25  ;;  %v1088_v25 = vld [vmem:[%s2398_s6 + $0x10] sm:$0xff] }
 0xe85   :  { %v1837_v10 = vpop.eup %1836 }
 0xe86   :  { %v836_v29 = vsub.f32 1.0, %v1837_v10  ;;  %v842_v1 = vmul.f32 %v1837_v10, %v2138_v15 }
 0xede   :  { %v827_v26 = vpop.permute.xlu1 %826 }
 0xedf   :  { %v829_v3 = vmul.f32 %v1837_v10, %v827_v26  ;;  %v1103_v10 = vmul.f32 %v2187_v7, %v1088_v25 }
 0xee1   :  { %831 = vrot.lane.b32.xlu0 %v829_v3, %s1911_s28  ;;  %v1115_v26 = vsel %vm195_vm2, %v1103_v10, 0.0  ;;  %v1183_v10 = vstv %s2401_s9  ;;  %s1915_s9 = smov [#allocation3]  }
 0xee2   :  { %s1553_s19 = sshll.u32 %s1915_s9, 4  ;;  %s1554_s19 = int_to_ptr.vmem [resolvable:$true] %s1553_s19 }
 0xee3   :  { %s1884_s20 = scalar_lea.vmem %s1554_s19, 128  ;;  %p1889_p1 = scmp.lt.s32.totalorder %s1554_s19, %s1554_s19 }
 0xee4   :  { %p1885_p0 = scmp.ne.s32.totalorder %s1554_s19, %s1884_s20  ;;  %p1890_p2 = scmp.lt.s32.totalorder %s1884_s20, %s1884_s20 }
 0xee6   :  { %p1891_p3 = por %p1890_p2, %p1889_p1 }
 0xee8   :  { %p1892_p4 = pnand %p1891_p3, %p1885_p0 }
 0xf53   :  { %v832_v13 = vpop.permute.xlu0 %831 }
 0xf54   :  { %v834_v27 = vadd.f32 %v832_v13, %v171_v22 }
 0xf56   :  { %1838 = vtanh.f32 %v834_v27 }
 0xf60   :  { %v1839_v28 = vpop.eup %1838 }
 0xf61   :  { %838 = vrot.lane.b32.xlu1 %v1839_v28, %s1912_s11 }
 0xfd3   :  { %v839_v31 = vpop.permute.xlu1 %838 }
 0xfd4   :  { %v841_v32 = vmul.f32 %v839_v31, %v836_v29 }
 0xfd6   :  { %v2155_v33 = vadd.f32 %v842_v1, %v841_v32 }
 0xfd8   :  { %852 = vrot.lane.b32.xlu0 %v2155_v33, %s1912_s11 }
0x104a   :  { %v853_v34 = vpop.permute.xlu0 %852 }
0x104b   :  { %1729 = vmatmul.mubr.msk.f32.vlgmr.msra.gmra.mrb[12].mxu0 %vm195_vm2, %v853_v34 }
0x111e   :  { %v922_v35 = vpop.f32.mrb[12].mxu0 }
0x111f   :  { %v933_v37 = vadd.f32 %v922_v35, %v2024_v16  ;;  %v1730_v38 = vpop.f32.mrb[13].mxu0  ;;  %v926_v40 = vadd.f32 %v922_v35, %v176_v39 }
0x1121   :  { %935 = vrot.lane.b32.xlu1 %v933_v37, %s1911_s28  ;;  %v1583_v41 = vmul.f32 -1.442695, %v926_v40 }
0x1123   :  { %1840 = vpow2.f32 %v1583_v41 }
0x112d   :  { %v1841_v42 = vpop.eup %1840 }
0x112e   :  { %v930_v43 = vadd.f32 1.0, %v1841_v42 }
0x1130   :  { %1842 = vrcp.f32 %v930_v43 }
0x113a   :  { %v1843_v44 = vpop.eup %1842 }
0x113b   :  { %v945_v50 = vsub.f32 1.0, %v1843_v44  ;;  %v951_v5 = vmul.f32 %v1843_v44, %v2155_v33 }
0x1193   :  { %v936_v45 = vpop.permute.xlu1 %935 }
0x1194   :  { %v938_v46 = vmul.f32 %v1843_v44, %v936_v45 }
0x1196   :  { %940 = vrot.lane.b32.xlu0 %v938_v46, %s1911_s28 }
0x1208   :  { %v941_v47 = vpop.permute.xlu0 %940 }
0x1209   :  { %v943_v48 = vadd.f32 %v941_v47, %v176_v39  ;;  %v1087_v47 = vld [vmem:[%s2398_s6 + $0x8] sm:$0xff] }
0x120b   :  { %1844 = vtanh.f32 %v943_v48  ;;  %v1102_v48 = vmul.f32 %v2187_v7, %v1087_v47 }
0x1215   :  { %v1845_v49 = vpop.eup %1844 }
0x1216   :  { %947 = vrot.lane.b32.xlu1 %v1845_v49, %s1912_s11  ;;  %v1089_v49 = vld [vmem:[%s2398_s6 + $0x18] sm:$0xff] }
0x1288   :  { %v948_v52 = vpop.permute.xlu1 %947 }
0x1289   :  { %v950_v53 = vmul.f32 %v948_v52, %v945_v50  ;;  %v1112_v50 = vsel %vm195_vm2, %v1102_v48, 0.0  ;;  %v1104_v52 = vmul.f32 %v2187_v7, %v1089_v49 }
0x128b   :  { %v2167_v54 = vadd.f32 %v951_v5, %v950_v53  ;;  %v1091_v5 = vld [vmem:[%s2398_s6 + $0x28] sm:$0xff]  ;;  %v1118_v53 = vsel %vm195_vm2, %v1104_v52, 0.0 }
0x128d   :  { %961 = vrot.lane.b32.xlu0 %v2167_v54, %s1912_s11 }
0x12ff   :  { %v962_v55 = vpop.permute.xlu0 %961 }
0x1300   :  { %1740 = vmatmul.mubr.msk.f32.vlgmr.msra.gmra.mrb[8].mxu1 %vm195_vm2, %v962_v55  ;;  %v1093_v55 = vld [vmem:[%s2398_s6 + $0x38] sm:$0xff] }
0x1301   :  { %v1108_v57 = vmul.f32 %v2187_v7, %v1093_v55 }
0x13d3   :  { %v1031_v58 = vpop.f32.mrb[8].mxu1 }
0x13d4   :  { %v1042_v59 = vadd.f32 %v1031_v58, %v2024_v16  ;;  %v1741_v60 = vpop.f32.mrb[9].mxu1  ;;  %v181_v16 = vadd.f32 %v2087_v4, %v2031_v20  ;;  %v736_v20 = vsel %vm735_vm9, 1, %v1913_v56  ;;  %v954_v4 = vsel %vm953_vm10, 1, %v1913_v56 }
0x13d5   :  { %vm1270_vm9 = vcmask 1047559   ;;  %vm1273_vm10 = vcmask 64512  }
0x13d6   :  { %1044 = vrot.lane.b32.xlu1 %v1042_v59, %s1911_s28  ;;  %v1035_v9 = vadd.f32 %v1031_v58, %v181_v16  ;;  %v1130_v58 = vsel %vm195_vm2, %v1108_v57, 0.0  ;;  %v1090_v59 = vld [vmem:[%s2398_s6 + $0x20] sm:$0xff] }
0x13d7   :  { %v1105_v60 = vmul.f32 %v2187_v7, %v1090_v59 }
0x13d8   :  { %v1585_v11 = vmul.f32 -1.442695, %v1035_v9  ;;  %v1134_v9 = vlaneseq }
0x13da   :  { %302 = vperm.xlu1 %1802, %v300_v61   ;;  %1846 = vpow2.f32 %v1585_v11  ;;  %v1135_v11 = vshrl.u32 %v1134_v9, 7 }
0x13de   :  { %520 = vperm.xlu1 %1802, %v518_v63   ;;  %v1092_v63 = vld [vmem:[%s2398_s6 + $0x30] sm:$0xff] }
0x13e2   :  { %629 = vperm.xlu1 %1802, %v627_v0  }
0x13e4   :  { %v1847_v12 = vpop.eup %1846 }
0x13e5   :  { %v1039_v2 = vadd.f32 1.0, %v1847_v12  ;;  %v1225_v12 = vand.u32 127, %v1134_v9 }
0x13e6   :  { %847 = vperm.xlu1 %1802, %v845_v6   ;;  %v1121_v6 = vsel %vm195_vm2, %v1105_v60, 0.0 }
0x13e7   :  { %1848 = vrcp.f32 %v1039_v2  ;;  %v2239_v2 = vsub.s32 %v1225_v12, %v1135_v11 }
0x13ea   :  { %1065 = vperm.xlu1 %1802, %v1063_v8   ;;  %v1107_v8 = vmul.f32 %v2187_v7, %v1092_v63 }
0x13ee   :  { %1075 = vrot.lane.b32.xlu1 %v1586_v21, %s1914_s24  ;;  %v2243_v21 = vsub.s32 1, %v1135_v11 }
0x13f1   :  { %v1849_v14 = vpop.eup %1848 }
0x13f2   :  { %v1054_v39 = vsub.f32 1.0, %v1849_v14 }
0x1412   :  { %1116 = vadd.xlane.f32.xlu1 %v1115_v26 }
0x1448   :  { %v1045_v17 = vpop.permute.xlu1 %1044 }
0x1449   :  { %v1047_v18 = vmul.f32 %v1849_v14, %v1045_v17 }
0x144b   :  { %1049 = vrot.lane.b32.xlu0 %v1047_v18, %s1911_s28 }
0x144f   :  { %411 = vperm.xlu0 %1803, %v409_v19   ;;  %v2241_v19 = vsub.s32 0, %v1135_v11 }
0x1453   :  { %738 = vperm.xlu0 %1803, %v736_v20   ;;  %v2245_v20 = vsub.s32 2, %v1135_v11 }
0x1457   :  { %956 = vperm.xlu0 %1803, %v954_v4   ;;  %v2247_v4 = vsub.s32 4, %v1135_v11 }
0x1459   :  { %v303_v3 = vpop.permute.xlu1 %302 }
0x145a   :  { %vm304_vm11 = vcmp.eq.s32.totalorder %v303_v3, 1 }
0x145b   :  { %v305_v29 = vsel %vm304_vm11, %v2036_v36, 0.0  ;;  %v1060_v36 = vmul.f32 %v1849_v14, %v2167_v54 }
0x145d   :  { %v521_v13 = vpop.permute.xlu1 %520 }
0x145e   :  { %vm522_vm13 = vcmp.eq.s32.totalorder %v521_v13, 1 }
0x1461   :  { %v630_v28 = vpop.permute.xlu1 %629 }
0x1462   :  { %vm631_vm14 = vcmp.eq.s32.totalorder %v630_v28, 1  ;;  %v2258_v28 = vsub.s32 6, %v1135_v11 }
0x1465   :  { %v848_v34 = vpop.permute.xlu1 %847 }
0x1466   :  { %vm849_vm0 = vcmp.eq.s32.totalorder %v848_v34, 1 }
0x1469   :  { %v1066_v38 = vpop.permute.xlu1 %1065 }
0x146a   :  { %vm1067_vm3 = vcmp.eq.s32.totalorder %v1066_v38, 1 }
0x14bd   :  { %v1050_v22 = vpop.permute.xlu0 %1049 }
0x14be   :  { %v1052_v23 = vadd.f32 %v1050_v22, %v181_v16  ;;  %v1127_v16 = vsel %vm195_vm2, %v1107_v8, 0.0 }
0x14c0   :  { %1850 = vtanh.f32 %v1052_v23  ;;  %v2249_v23 = vsub.s32 3, %v1135_v11 }
0x14ca   :  { %v1851_v24 = vpop.eup %1850 }
0x14cb   :  { %1056 = vrot.lane.b32.xlu0 %v1851_v24, %s1912_s11 }
0x14ce   :  { %v412_v27 = vpop.permute.xlu0 %411 }
0x14cf   :  { %vm413_vm12 = vcmp.eq.s32.totalorder %v412_v27, 1 }
0x14d0   :  { %v414_v1 = vsel %vm413_vm12, %v2079_v62, %v305_v29 }
0x14d1   :  { %v523_v32 = vsel %vm522_vm13, %v2104_v30, %v414_v1  ;;  %v1076_v30 = vpop.permute.xlu1 %1075  ;;  %v2261_v1 = vsub.s32 5, %v1135_v11 }
0x14d2   :  { %v739_v31 = vpop.permute.xlu0 %738  ;;  %v632_v37 = vsel %vm631_vm14, %v2121_v51, %v523_v32 }
0x14d3   :  { %vm740_vm15 = vcmp.eq.s32.totalorder %v739_v31, 1 }
0x14d4   :  { %v741_v40 = vsel %vm740_vm15, %v2138_v15, %v632_v37  ;;  %v1086_v15 = vld [vmem:[%s2398_s6] sm:$0xff] }
0x14d5   :  { %v850_v62 = vsel %vm849_vm0, %v2155_v33, %v741_v40  ;;  %v1101_v46 = vmul.f32 %v2187_v7, %v1086_v15  ;;  %v1117_v17 = vpop.xlane.xlu1 %1116  ;;  %v2270_v40 = vsub.s32 7, %v1135_v11 }
0x14d6   :  { %v957_v35 = vpop.permute.xlu0 %956 }
0x14d7   :  { %vm958_vm1 = vcmp.eq.s32.totalorder %v957_v35, 1  ;;  %v1109_v33 = vsel %vm195_vm2, %v1101_v46, 0.0 }
0x14d8   :  { %v959_v44 = vsel %vm958_vm1, %v2167_v54, %v850_v62  ;;  %v1106_v54 = vmul.f32 %v2187_v7, %v1091_v5 }
0x14da   :  { %v1124_v56 = vsel %vm195_vm2, %v1106_v54, 0.0 }
0x153d   :  { %v1057_v41 = vpop.permute.xlu0 %1056 }
0x153e   :  { %v1059_v42 = vmul.f32 %v1057_v41, %v1054_v39 }
0x1540   :  { %v1061_v43 = vadd.f32 %v1060_v36, %v1059_v42 }
0x1542   :  { %v1068_v45 = vsel %vm1067_vm3, %v1061_v43, %v959_v44 }
0x1543   :  { %v1078_v51 = vmul.f32 %v1076_v30, %v1068_v45 }
0x1545   :  { %1080 = vrot.lane.b32.xlu0 %v1078_v51, %s1912_s11 }
0x1564   :  { %1110 = vadd.xlane.f32.xlu0 %v1109_v33 }
0x1568   :  { %1113 = vadd.xlane.f32.xlu0 %v1112_v50 }
0x156c   :  { %1119 = vadd.xlane.f32.xlu0 %v1118_v53 }
0x1570   :  { %1125 = vadd.xlane.f32.xlu0 %v1124_v56 }
0x1574   :  { %1131 = vadd.xlane.f32.xlu0 %v1130_v58 }
0x15b7   :  { %v1081_v61 = vpop.permute.xlu0 %1080 }
0x15b8   :  { %v1083_v0 = vsel %vm195_vm2, %v1081_v61, 0.0  ;;  %vm1258_vm2 = vcmask 1041409  }
0x15b9   :  { %1084 = vadd.xlane.f32.xlu1 %v1083_v0 }
0x15bd   :  { %1122 = vadd.xlane.f32.xlu1 %v1121_v6 }
0x15c1   :  { %1128 = vadd.xlane.f32.xlu1 %v1127_v16 }
0x15f1   :  { %v1111_v14 = vpop.xlane.xlu0 %1110 }
0x15f5   :  { %v1114_v18 = vpop.xlane.xlu0 %1113 }
0x15f9   :  { %v1120_v25 = vpop.xlane.xlu0 %1119 }
0x15fd   :  { %v1126_v39 = vpop.xlane.xlu0 %1125 }
0x1601   :  { %v1132_v46 = vpop.xlane.xlu0 %1131 }
0x1646   :  { %v1085_v22 = vpop.xlane.xlu1 %1084 }
0x1647   :  { %v1137_v24 = vrot.slane %v1085_v22, %v2241_v19  ;;  %v1141_v7 = vrot.slane %v1085_v22, %v2243_v21  ;;  %v1145_v26 = vrot.slane %v1085_v22, %v2245_v20  ;;  %v1153_v3 = vrot.slane %v1085_v22, %v2247_v4 }
0x1648   :  { %v1149_v31 = vrot.slane %v1085_v22, %v2249_v23  ;;  %v1161_v38 = vrot.slane %v1085_v22, %v2258_v28  ;;  %v1157_v36 = vrot.slane %v1085_v22, %v2261_v1  ;;  %v1165_v44 = vrot.slane %v1085_v22, %v2270_v40 }
0x1649   :  { %v1174_v13 = vadd.f32 %v1137_v24, %v1111_v14  ;;  %v1175_v27 = vadd.f32 %v1141_v7, %v1114_v18  ;;  %v1176_v37 = vadd.f32 %v1145_v26, %v1117_v17 }
0x164a   :  { %v1123_v29 = vpop.xlane.xlu1 %1122  ;;  %v1177_v30 = vadd.f32 %v1149_v31, %v1120_v25  ;;  %v1179_v15 = vadd.f32 %v1157_v36, %v1126_v39  ;;  %v1181_v47 = vadd.f32 %v1165_v44, %v1132_v46 }
0x164b   :  { %v1178_v32 = vadd.f32 %v1153_v3, %v1123_v29  ;;  %v2263_v34 = vadd.f32 %v1183_v10, %v1174_v13  ;;  %v2265_v35 = vadd.f32 %v1183_v10, %v1175_v27  ;;  %v1186_v43 = vadd.f32 %v1183_v10, %v1176_v37 }
0x164c   :  { %v1187_v51 = vadd.f32 %v1183_v10, %v1177_v30  ;;  %v1189_v33 = vadd.f32 %v1183_v10, %v1179_v15  ;;  %v2280_v48 = vadd.f32 %v1183_v10, %v1181_v47 }
0x164d   :  { %1201 = vperm.xlu1 %1802, %v2263_v34   ;;  %1204 = vperm.xlu0 %1803, %v2265_v35   ;;  %v2273_v42 = vadd.f32 %v1183_v10, %v1178_v32 }
0x164e   :  { %v1129_v41 = vpop.xlane.xlu1 %1128 }
0x164f   :  { %v1180_v62 = vadd.f32 %v1161_v38, %v1129_v41 }
0x1651   :  { %1207 = vperm.xlu1 %1802, %v1186_v43   ;;  %1213 = vperm.xlu0 %1803, %v2273_v42   ;;  %v2277_v45 = vadd.f32 %v1183_v10, %v1180_v62 }
0x1655   :  { %1219 = vperm.xlu0 %1803, %v2277_v45   ;;  %1210 = vperm.xlu1 %1802, %v1187_v51  }
0x1659   :  { %1216 = vperm.xlu1 %1802, %v1189_v33  }
0x165d   :  { %1222 = vperm.xlu1 %1802, %v2280_v48  }
0x16cc   :  { %v1202_v49 = vpop.permute.xlu1 %1201  ;;  %v1205_v50 = vpop.permute.xlu0 %1204 }
0x16cd   :  { %v1229_v5 = vrot.slane %v1202_v49, %v2239_v2  ;;  %v1233_v53 = vrot.slane %v1205_v50, %v2239_v2 }
0x16cf   :  { %v1259_v57 = vsel %vm1258_vm2, %v1233_v53, %v1229_v5 }
0x16d0   :  { %v1208_v52 = vpop.permute.xlu1 %1207  ;;  %v1214_v55 = vpop.permute.xlu0 %1213 }
0x16d1   :  { %v1237_v54 = vrot.slane %v1208_v52, %v2239_v2  ;;  %v1245_v61 = vrot.slane %v1214_v55, %v2239_v2 }
0x16d3   :  { %v1261_v59 = vsel %vm1260_vm4, %v1237_v54, %v1259_v57 }
0x16d4   :  { %v1211_v56 = vpop.permute.xlu1 %1210  ;;  %v1220_v0 = vpop.permute.xlu0 %1219 }
0x16d5   :  { %v1241_v58 = vrot.slane %v1211_v56, %v2239_v2  ;;  %v1253_v9 = vrot.slane %v1220_v0, %v2239_v2 }
0x16d7   :  { %v1263_v60 = vsel %vm1262_vm5, %v1241_v58, %v1261_v59 }
0x16d8   :  { %v1217_v63 = vpop.permute.xlu1 %1216  ;;  %v1265_v8 = vsel %vm1264_vm6, %v1245_v61, %v1263_v60 }
0x16d9   :  { %v1249_v6 = vrot.slane %v1217_v63, %v2239_v2 }
0x16db   :  { %v1267_v16 = vsel %vm1266_vm7, %v1249_v6, %v1265_v8 }
0x16dc   :  { %v1223_v11 = vpop.permute.xlu1 %1222  ;;  %v1269_v14 = vsel %vm1268_vm8, %v1253_v9, %v1267_v16 }
0x16dd   :  { %v1257_v12 = vrot.slane %v1223_v11, %v2239_v2 }
0x16df   :  { %v1271_v17 = vsel %vm1270_vm9, %v1257_v12, %v1269_v14 }
0x16e0   :  { %v1274_v18 = vsel %vm1273_vm10, %v1271_v17, -inf }
0x16e1   :  { %1275 = vmax.xlane.f32.xlu0 %v1274_v18 }
0x176e   :  { %v1276_v22 = vpop.xlane.xlu0 %1275 }
0x176f   :  { %v1281_v24 = vrot.slane %v1276_v22, %v2241_v19  ;;  %v1285_v7 = vrot.slane %v1276_v22, %v2243_v21  ;;  %v1289_v25 = vrot.slane %v1276_v22, %v2245_v20  ;;  %v1293_v13 = vrot.slane %v1276_v22, %v2249_v23 }
0x1770   :  { %v1297_v31 = vrot.slane %v1276_v22, %v2247_v4  ;;  %v1301_v38 = vrot.slane %v1276_v22, %v2261_v1  ;;  %v1309_v30 = vrot.slane %v1276_v22, %v2270_v40 }
0x1771   :  { %v1318_v10 = vsub.f32 %v2263_v34, %v1281_v24  ;;  %v1319_v26 = vsub.f32 %v2265_v35, %v1285_v7  ;;  %v1320_v27 = vsub.f32 %v1186_v43, %v1289_v25  ;;  %v1321_v32 = vsub.f32 %v1187_v51, %v1293_v13 }
0x1772   :  { %v1322_v39 = vsub.f32 %v2273_v42, %v1297_v31  ;;  %v1305_v35 = vrot.slane %v1276_v22, %v2258_v28  ;;  %v1323_v36 = vsub.f32 %v1189_v33, %v1301_v38  ;;  %v1325_v15 = vsub.f32 %v2280_v48, %v1309_v30 }
0x1773   :  { %v1326_v3 = vmul.f32 1.442695, %v1318_v10  ;;  %v1328_v29 = vmul.f32 1.442695, %v1319_v26  ;;  %v1330_v37 = vmul.f32 1.442695, %v1320_v27 }
0x1774   :  { %v1332_v41 = vmul.f32 1.442695, %v1321_v32  ;;  %v1334_v62 = vmul.f32 1.442695, %v1322_v39  ;;  %v1324_v44 = vsub.f32 %v2277_v45, %v1305_v35  ;;  %v1336_v51 = vmul.f32 1.442695, %v1323_v36 }
0x1775   :  { %1852 = vpow2.f32 %v1326_v3  ;;  %v1340_v33 = vmul.f32 1.442695, %v1325_v15 }
0x1776   :  { %1854 = vpow2.f32 %v1328_v29  ;;  %v1338_v46 = vmul.f32 1.442695, %v1324_v44 }
0x1777   :  { %1856 = vpow2.f32 %v1330_v37 }
0x1778   :  { %1858 = vpow2.f32 %v1332_v41 }
0x1779   :  { %1860 = vpow2.f32 %v1334_v62 }
0x177a   :  { %1862 = vpow2.f32 %v1336_v51 }
0x177b   :  { %1864 = vpow2.f32 %v1338_v46 }
0x177c   :  { %1866 = vpow2.f32 %v1340_v33 }
0x177f   :  { %v2308_v34 = vpop.eup %1852 }
0x1780   :  { %1351 = vperm.xlu1 %1802, %v2308_v34   ;;  %v1855_v43 = vpop.eup %1854 }
0x1781   :  { %v2314_v42 = vpop.eup %1856 }
0x1782   :  { %v2318_v47 = vpop.eup %1858 }
0x1783   :  { %v2321_v49 = vpop.eup %1860 }
0x1784   :  { %1354 = vperm.xlu1 %1802, %v1855_v43   ;;  %v2324_v45 = vpop.eup %1862 }
0x1785   :  { %v2327_v50 = vpop.eup %1864 }
0x1786   :  { %v2330_v48 = vpop.eup %1866 }
0x1788   :  { %1357 = vperm.xlu1 %1802, %v2314_v42  }
0x178c   :  { %1360 = vperm.xlu1 %1802, %v2318_v47  }
0x1790   :  { %1363 = vperm.xlu1 %1802, %v2321_v49  }
0x1794   :  { %1366 = vperm.xlu1 %1802, %v2324_v45  }
0x1798   :  { %1369 = vperm.xlu1 %1802, %v2327_v50  }
0x179c   :  { %1372 = vperm.xlu1 %1802, %v2330_v48  }
0x17ff   :  { %v1352_v52 = vpop.permute.xlu1 %1351 }
0x1800   :  { %v1377_v59 = vrot.slane %v1352_v52, %v2239_v2 }
0x1803   :  { %v1355_v5 = vpop.permute.xlu1 %1354 }
0x1804   :  { %v1381_v57 = vrot.slane %v1355_v5, %v2239_v2 }
0x1806   :  { %v1406_v0 = vsel %vm1258_vm2, %v1381_v57, %v1377_v59 }
0x1807   :  { %v1358_v53 = vpop.permute.xlu1 %1357 }
0x1808   :  { %v1385_v58 = vrot.slane %v1358_v53, %v2239_v2 }
0x180a   :  { %v1407_v8 = vsel %vm1260_vm4, %v1385_v58, %v1406_v0 }
0x180b   :  { %v1361_v54 = vpop.permute.xlu1 %1360 }
0x180c   :  { %v1389_v60 = vrot.slane %v1361_v54, %v2239_v2 }
0x180e   :  { %v1408_v9 = vsel %vm1262_vm5, %v1389_v60, %v1407_v8 }
0x180f   :  { %v1364_v55 = vpop.permute.xlu1 %1363 }
0x1810   :  { %v1393_v61 = vrot.slane %v1364_v55, %v2239_v2 }
0x1812   :  { %v1409_v11 = vsel %vm1264_vm6, %v1393_v61, %v1408_v9 }
0x1813   :  { %v1367_v56 = vpop.permute.xlu1 %1366 }
0x1814   :  { %v1397_v6 = vrot.slane %v1367_v56, %v2239_v2 }
0x1816   :  { %v1410_v14 = vsel %vm1266_vm7, %v1397_v6, %v1409_v11 }
0x1817   :  { %v1370_v63 = vpop.permute.xlu1 %1369 }
0x1818   :  { %v1401_v16 = vrot.slane %v1370_v63, %v2239_v2 }
0x181a   :  { %v1411_v18 = vsel %vm1268_vm8, %v1401_v16, %v1410_v14 }
0x181b   :  { %v1373_v12 = vpop.permute.xlu1 %1372 }
0x181c   :  { %v1405_v17 = vrot.slane %v1373_v12, %v2239_v2 }
0x181e   :  { %v1412_v22 = vsel %vm1270_vm9, %v1405_v17, %v1411_v18 }
0x181f   :  { %v1414_v24 = vsel %vm1273_vm10, %v1412_v22, 0.0 }
0x1820   :  { %1415 = vadd.xlane.f32.xlu0 %v1414_v24 }
0x18ad   :  { %v1416_v7 = vpop.xlane.xlu0 %1415 }
0x18ae   :  { %v1425_v25 = vrot.slane %v1416_v7, %v2243_v21  ;;  %v1421_v10 = vrot.slane %v1416_v7, %v2241_v19  ;;  %v1429_v26 = vrot.slane %v1416_v7, %v2245_v20  ;;  %v1433_v3 = vrot.slane %v1416_v7, %v2249_v23 }
0x18af   :  { %v1437_v13 = vrot.slane %v1416_v7, %v2247_v4  ;;  %v1441_v32 = vrot.slane %v1416_v7, %v2261_v1  ;;  %v1445_v19 = vrot.slane %v1416_v7, %v2258_v28  ;;  %v1449_v4 = vrot.slane %v1416_v7, %v2270_v40 }
0x18b0   :  { %1868 = vrcp.f32 %v1425_v25 }
0x18b1   :  { %1870 = vrcp.f32 %v1421_v10 }
0x18b2   :  { %1872 = vrcp.f32 %v1429_v26 }
0x18b3   :  { %1874 = vrcp.f32 %v1433_v3 }
0x18b4   :  { %1876 = vrcp.f32 %v1437_v13 }
0x18b5   :  { %1878 = vrcp.f32 %v1441_v32 }
0x18b6   :  { %1880 = vrcp.f32 %v1445_v19 }
0x18b7   :  { %1882 = vrcp.f32 %v1449_v4 }
0x18ba   :  { %v1869_v27 = vpop.eup %1868 }
0x18bb   :  { %v1871_v29 = vpop.eup %1870  ;;  %v1461_v31 = vmul.f32 %v1869_v27, %v1855_v43 }
0x18bc   :  { %v1459_v21 = vmul.f32 %v1871_v29, %v2308_v34  ;;  %v1873_v37 = vpop.eup %1872 }
0x18bd   :  { %1486 = vperm.xlu0 %1803, %v1461_v31   ;;  %v1463_v20 = vmul.f32 %v1873_v37, %v2314_v42  ;;  %v1875_v23 = vpop.eup %1874 }
0x18be   :  { %1483 = vperm.xlu1 %1802, %v1459_v21   ;;  %v1465_v38 = vmul.f32 %v1875_v23, %v2318_v47  ;;  %v1877_v39 = vpop.eup %1876 }
0x18bf   :  { %v1467_v1 = vmul.f32 %v1877_v39, %v2321_v49  ;;  %v1879_v41 = vpop.eup %1878 }
0x18c0   :  { %v1469_v34 = vmul.f32 %v1879_v41, %v2324_v45  ;;  %v1881_v35 = vpop.eup %1880 }
0x18c1   :  { %v1471_v28 = vmul.f32 %v1881_v35, %v2327_v50  ;;  %v1883_v36 = vpop.eup %1882 }
0x18c2   :  { %1489 = vperm.xlu1 %1802, %v1463_v20   ;;  %v1473_v62 = vmul.f32 %v1883_v36, %v2330_v48 }
0x18c6   :  { %1492 = vperm.xlu1 %1802, %v1465_v38  }
0x18ca   :  { %1495 = vperm.xlu1 %1802, %v1467_v1  }
0x18ce   :  { %1498 = vperm.xlu1 %1802, %v1469_v34  }
0x18d2   :  { %1501 = vperm.xlu1 %1802, %v1471_v28  }
0x18d6   :  { %1504 = vperm.xlu1 %1802, %v1473_v62  }
0x193c   :  { %v1487_v51 = vpop.permute.xlu0 %1486 }
0x193d   :  { %v1484_v40 = vpop.permute.xlu1 %1483  ;;  %v1513_v15 = vrot.slane %v1487_v51, %v2239_v2 }
0x193e   :  { %v1509_v46 = vrot.slane %v1484_v40, %v2239_v2 }
0x1940   :  { %v1538_v50 = vsel %vm1258_vm2, %v1513_v15, %v1509_v46 }
0x1941   :  { %v1490_v43 = vpop.permute.xlu1 %1489 }
0x1942   :  { %v1517_v47 = vrot.slane %v1490_v43, %v2239_v2 }
0x1944   :  { %v1539_v52 = vsel %vm1260_vm4, %v1517_v47, %v1538_v50 }
0x1945   :  { %v1493_v30 = vpop.permute.xlu1 %1492 }
0x1946   :  { %v1521_v33 = vrot.slane %v1493_v30, %v2239_v2 }
0x1948   :  { %v1540_v53 = vsel %vm1262_vm5, %v1521_v33, %v1539_v52 }
0x1949   :  { %v1496_v44 = vpop.permute.xlu1 %1495 }
0x194a   :  { %v1525_v49 = vrot.slane %v1496_v44, %v2239_v2 }
0x194c   :  { %v1541_v54 = vsel %vm1264_vm6, %v1525_v49, %v1540_v53 }
0x194d   :  { %v1499_v42 = vpop.permute.xlu1 %1498 }
0x194e   :  { %v1529_v48 = vrot.slane %v1499_v42, %v2239_v2 }
0x1950   :  { %v1542_v56 = vsel %vm1266_vm7, %v1529_v48, %v1541_v54 }
0x1951   :  { %v1502_v45 = vpop.permute.xlu1 %1501 }
0x1952   :  { %v1533_v5 = vrot.slane %v1502_v45, %v2239_v2 }
0x1954   :  { %v1543_v58 = vsel %vm1268_vm8, %v1533_v5, %v1542_v56 }
0x1955   :  { %v1505_v55 = vpop.permute.xlu1 %1504 }
0x1956   :  { %v1537_v57 = vrot.slane %v1505_v55, %v2239_v2 }
0x1958   :  { %v1544_v59 = vsel %vm1270_vm9, %v1537_v57, %v1543_v58 }
0x1959   :  { %1546 = vst.msk [vmem:[#allocation3] sm:$0xff] %vm1273_vm10, %v1544_v59 }
0x195a   :  { %1895 = shalt.err (!%p1892_p4)
}
0x195b   :  { %s1896_s0 = scalar_lea.hbm %s2402_s10, 128 }
0x195c   :  { %p1897_p5 = scmp.ne.s32.totalorder %s2402_s10, %s1896_s0  ;;  %p1900_p6 = scmp.lt.u32.totalorder %s1896_s0, %s2402_s10 }
0x195e   :  { %p1902_p7 = pnand %p1900_p6, %p1897_p5 }
0x1960   :  { %1905 = shalt.err (!%p1902_p7)
}
0x1961   :  { %1556 = dma.vmem_to_hbm [thread:$0]  %s1554_s19, 128, %s2402_s10, [#allocation4]  }
0x1962   :  { %1906 = dma.done.wait [#allocation4], 128  }
0x1963   :  { %1907 = vsyncadd [#allocation4], 4294967168 }
0x1964   :  { %1560 = vsyncpa [#allocation4], 1 }

</bundles_post_ra>
